<compile_context>
chip_gen: v7x
topology: tpu7x:2x2x1
jax: 0.10.0
libtpu: 0.0.40
codegen_flags: <defaults>
</compile_context>

<pallas_src>
import functools

import jax
import jax.numpy as jnp
from jax import lax
from jax.experimental import pallas as pl
from jax.experimental.pallas import tpu as pltpu


# ------------------------------ Pallas kernel -------------------------------

def _encoder_kernel(xp_ref, pemb_ref, w1_ref, w2_ref, b2_ref, o_ref, acc_ref):
    """Fused patch-embed (+folded prefix bias) + mean-pool + projection + l2-norm.

    xp_ref  : [TB, TN, PD] bf16  patchified image tile
    pemb_ref: [TN, D]      f32   per-patch bias = patchify(prefix) @ W1 + b1
    w1_ref  : [PD, D]      bf16  patch embedding           (invariant, single-buffered)
    w2_ref  : [D, DO]      bf16  projection, pre-scaled 1/N (invariant, single-buffered)
    b2_ref  : [1, DO]      f32                              (invariant, single-buffered)
    o_ref   : [TB, DO]     f32   l2-normalized features (resident across patch axis)
    acc_ref : [TB, D]      f32   VMEM scratch: pooled-sum accumulator
    """
    ni = pl.program_id(1)

    @pl.when(ni == 0)
    def _():
        acc_ref[...] = jnp.zeros_like(acc_ref)

    tb, tn, pd = xp_ref.shape
    # Patch embedding on the MXU (M = tb*tn rows), f32 accumulation.
    h = jnp.dot(xp_ref[...].reshape(tb * tn, pd), w1_ref[...],
                preferred_element_type=jnp.float32)
    # Folded prefix (+b1) bias, broadcast over the batch tile, then ReLU (f32, VPU).
    h = h.reshape(tb, tn, -1) + pemb_ref[...][None, :, :]
    h = jnp.maximum(h, 0.0)
    # Accumulate the pooled sum across the patch (reduction) grid axis (XLU reduce).
    acc_ref[...] += jnp.sum(h, axis=1)

    @pl.when(ni == pl.num_programs(1) - 1)
    def _():
        pooled = acc_ref[...].astype(w2_ref.dtype)          # bf16 operand for the MXU
        out = jnp.dot(pooled, w2_ref[...],
                      preferred_element_type=jnp.float32) + b2_ref[...]
        ssq = jnp.sum(out * out, axis=-1, keepdims=True)
        o_ref[...] = (out * lax.rsqrt(ssq + 1e-12)).astype(o_ref.dtype)


# ------------------------------ host-side glue ------------------------------

def patchify(x_nchw, patch):
    """[B, C, H, W] -> [B, N_patches, C*patch*patch] (pure reshape/transpose glue)."""
    B, C, H, W = x_nchw.shape
    hp, wp = H // patch, W // patch
    x = x_nchw.reshape(B, C, hp, patch, wp, patch)
    x = jnp.transpose(x, (0, 2, 4, 1, 3, 5))
    return x.reshape(B, hp * wp, C * patch * patch)


def prepare_params(params, patch):
    """One-time (host-side) parameter prep.

    * Fold the learnable pixel prefix through the patch embedding into a per-patch
      bias:  prefix_emb = patchify(prefix) @ W1 + b1   (shape [N, D], f32).
      This is exact because the elementwise add commutes with patchify and
      distributes over the matmul: relu((x+p)@W1 + b1) == relu(x@W1 + (p@W1 + b1)).
    * Fold the 1/N mean-pool scale into W2 (b2 untouched => exact mean-pool + proj).
    * Cast matmul weights to bf16.  (Re-run if `patch` or the prefix changes.)
    """
    prefix = params["prefix"]                               # [C, H, W] f32
    C, H, W = prefix.shape
    n_patches = (H // patch) * (W // patch)

    w1 = params["w1"].astype(jnp.bfloat16)                  # [PD, D]
    pp = patchify(prefix[None], patch)[0]                   # [N, PD]
    prefix_emb = (jnp.dot(pp.astype(jnp.bfloat16), w1,
                          preferred_element_type=jnp.float32)
                  + params["b1"].astype(jnp.float32))       # [N, D] f32

    w2 = (params["w2"] * (1.0 / n_patches)).astype(jnp.bfloat16)
    return {
        "prefix_emb": prefix_emb,                           # [N, D]  f32
        "w1": w1,                                           # [PD, D] bf16
        "w2": w2,                                           # [D, DO] bf16 (x 1/N)
        "b2": params["b2"].astype(jnp.float32),             # [1, DO] f32
    }


def _vmem_limit_bytes():
    """Generation-aware VMEM limit: ~3/4 of physical, capped at 96 MiB.

    v5e/v6e (128 MiB phys, 16/32 MiB scoped default) -> 96 MiB.
    v7x     (64 MiB phys)                            -> 48 MiB.
    """
    try:
        cap = int(pltpu.get_tpu_info().vmem_capacity_bytes)
    except Exception:
        cap = 64 * 1024 * 1024          # conservative fallback (safe on all gens)
    return min(cap * 3 // 4, 96 * 1024 * 1024)


def _choose_tiles(B, N, PD, tile_b=None, tile_n=None,
                  target_m=256, max_block_bytes=4 << 20):
    """Pick (tile_b, tile_n).

    Goals: tile_n a multiple of 8 (free sublane regroup for the in-kernel reshape)
    or == N; tile_b a multiple of 8 (sublane-full output stores) or == B; first
    matmul rows M = tile_b*tile_n >= target_m (fills the 256-wide v6e/v7x MXU);
    batch grid extent >= 2 when possible (v7x megacore); activation block bounded
    so the double-buffered stream fits v7x's 64 MiB VMEM with headroom.
    NOTE: never zero-pad N to make tiling even — relu(b1) from padded patches would
    leak into the pooled sum; use divisor-based tiles instead.
    """
    if tile_n is None:
        tile_n = N
        for t in range(min(N, 64), 7, -1):
            if N % t == 0 and t % 8 == 0:
                tile_n = t
                break
    if N % tile_n:
        raise ValueError(f"tile_n={tile_n} must divide N={N}")

    if tile_b is None:
        cands = sorted({d for d in range(8, B + 1, 8) if B % d == 0} | {B})
        fits = [tb for tb in cands if tb * tile_n * PD * 2 <= max_block_bytes]
        if not fits:
            fits = cands[:1]
        best = None
        for tb in fits:                                   # ascending
            if tb * tile_n >= target_m and B // tb >= 2:  # MXU full + megacore split
                best = tb
                break
        if best is None:
            for tb in fits:
                if tb * tile_n >= target_m:
                    best = tb
                    break
        if best is None:
            split = [tb for tb in fits if B // tb >= 2]
            best = split[-1] if split else fits[-1]
        tile_b = best
    if B % tile_b:
        raise ValueError(f"tile_b={tile_b} must divide B={B}")
    return tile_b, tile_n


@functools.partial(jax.jit, static_argnames=("patch", "tile_b", "tile_n"))
def image_prefix_model_forward(x_nchw, prep, patch=4, tile_b=None, tile_n=None):
    """Equivalent of ImagePrefixModel.forward: out = image_encoder(x, prefix)."""
    B = x_nchw.shape[0]
    # TODO(synk): verify in xprof that XLA fuses this re-layout with the bf16 cast;
    # for HBM-bound sizes, push patchify into the kernel (memory_space=pl.ANY row-band
    # DMA + in-kernel pltpu.einshape) to avoid the extra HBM pass over the activation.
    xp = patchify(x_nchw, patch).astype(jnp.bfloat16)       # [B, N, PD]
    _, N, PD = xp.shape
    D = prep["w1"].shape[1]
    DO = prep["w2"].shape[1]

    tb, tn = _choose_tiles(B, N, PD, tile_b, tile_n)
    grid = (B // tb, N // tn)        # (parallel over batch, reduction over patches)

    invariant = dict(pipeline_mode=pl.Buffered(1))          # no useless 2nd buffer

    return pl.pallas_call(
        _encoder_kernel,
        out_shape=jax.ShapeDtypeStruct((B, DO), jnp.float32),
        grid_spec=pltpu.PrefetchScalarGridSpec(
            num_scalar_prefetch=0,
            grid=grid,
            in_specs=[
                pl.BlockSpec((tb, tn, PD), lambda bi, ni: (bi, ni, 0)),
                pl.BlockSpec((tn, D), lambda bi, ni: (ni, 0)),
                pl.BlockSpec((PD, D), lambda bi, ni: (0, 0), **invariant),
                pl.BlockSpec((D, DO), lambda bi, ni: (0, 0), **invariant),
                pl.BlockSpec((1, DO), lambda bi, ni: (0, 0), **invariant),
            ],
            out_specs=pl.BlockSpec((tb, DO), lambda bi, ni: (bi, 0)),
            scratch_shapes=[pltpu.VMEM((tb, D), jnp.float32)],
        ),
        compiler_params=pltpu.CompilerParams(
            dimension_semantics=("parallel", "arbitrary"),
            vmem_limit_bytes=_vmem_limit_bytes(),
        ),
    )(xp, prep["prefix_emb"], prep["w1"], prep["w2"], prep["b2"])


# ----------------------- pure-JAX reference (same math) ---------------------

def reference_forward(x_nchw, params, patch=4):
    """encoder(x, prefix) = l2norm(mean_pool(relu(patchify(x+prefix)@W1+b1)) @ W2 + b2)."""
    xp = patchify(x_nchw + params["prefix"][None], patch)   # [B, N, PD] f32
    B, N, PD = xp.shape
    w1 = params["w1"].astype(jnp.bfloat16)
    w2 = params["w2"].astype(jnp.bfloat16)
    h = jnp.dot(xp.astype(jnp.bfloat16).reshape(B * N, PD), w1,
                preferred_element_type=jnp.float32) + params["b1"]
    h = jnp.maximum(h, 0.0)
    pooled = jnp.mean(h.reshape(B, N, -1), axis=1)
    out = jnp.dot(pooled.astype(jnp.bfloat16), w2,
                  preferred_element_type=jnp.float32) + params["b2"]
    return out * lax.rsqrt(jnp.sum(out * out, axis=-1, keepdims=True) + 1e-12)


# ------------------------------------ main -----------------------------------

if __name__ == "__main__":
    B, C, H, W = 16, 4, 32, 32
    PATCH = 4
    PD = C * PATCH * PATCH          # 64 (no K padding: full-dim block is legal)
    D, DO = 256, 256                # multiples of the v6e/v7x 256-wide MXU
    N = (H // PATCH) * (W // PATCH)  # 64 patches

    key = jax.random.PRNGKey(0)
    kx, kp, k1, kb1, k2, kb2 = jax.random.split(key, 6)

    x = jax.random.normal(kx, (B, C, H, W), dtype=jnp.float32)
    params = {
        # learnable pixel prefix (the nn.Parameter(initial_prefix))
        "prefix": 0.1 * jax.random.normal(kp, (C, H, W), dtype=jnp.float32),
        # synthesized encoder weights
        "w1": 0.05 * jax.random.normal(k1, (PD, D), dtype=jnp.float32),
        "b1": 0.01 * jax.random.normal(kb1, (1, D), dtype=jnp.float32),
        "w2": 0.05 * jax.random.normal(k2, (D, DO), dtype=jnp.float32),
        "b2": 0.01 * jax.random.normal(kb2, (1, DO), dtype=jnp.float32),
    }

    prep = prepare_params(params, PATCH)
    ref = reference_forward(x, params, patch=PATCH)

    # 1) auto-chosen tiles: (tile_b=8, tile_n=64) -> grid (2, 1), M = 512.
    out_auto = jax.block_until_ready(image_prefix_model_forward(x, prep, patch=PATCH))
    # 2) explicit small tiles: grid (2, 4) exercises the multi-step pooled reduction
    #    (pl.when init / accumulate / finalize) plus the parallel batch axis.
    out_tiled = jax.block_until_ready(
        image_prefix_model_forward(x, prep, patch=PATCH, tile_b=8, tile_n=16))

    assert out_auto.shape == (B, DO)
    assert out_tiled.shape == (B, DO)
    for name, out in (("auto", out_auto), ("tiled", out_tiled)):
        err = jnp.max(jnp.abs(out - ref))
        assert jnp.allclose(out, ref, atol=5e-3, rtol=5e-3), (
            f"{name}: mismatch vs reference, max abs err={err}")

    print("KERNEL_OK")
</pallas_src>

<mosaic_0001>
module attributes {stable_mosaic.version = 11 : i64} {
  func.func @_encoder_kernel(%arg0: i32, %arg1: i32, %arg2: memref<8x64x64xbf16, #tpu.memory_space<vmem>>, %arg3: memref<64x256xf32, #tpu.memory_space<vmem>>, %arg4: memref<64x256xbf16, #tpu.memory_space<vmem>>, %arg5: memref<256x256xbf16, #tpu.memory_space<vmem>>, %arg6: memref<1x256xf32, #tpu.memory_space<vmem>>, %arg7: memref<8x256xf32, #tpu.memory_space<vmem>>, %arg8: memref<8x256xf32, #tpu.memory_space<vmem>>) attributes {dimension_semantics = [#tpu.dimension_semantics<parallel>, #tpu.dimension_semantics<arbitrary>], iteration_bounds = array<i64: 2, 1>, scalar_prefetch = 0 : i64, scratch_operands = 1 : i64, tpu.core_type = #tpu.core_type<tc>, window_params = [{transform_indices = @transform_0, window_bounds = array<i64: 8, 64, 64>}, {transform_indices = @transform_1, window_bounds = array<i64: 64, 256>}, {pipeline_mode = #tpu.pipeline_mode<synchronous>, transform_indices = @transform_2, window_bounds = array<i64: 64, 256>}, {pipeline_mode = #tpu.pipeline_mode<synchronous>, transform_indices = @transform_3, window_bounds = array<i64: 256, 256>}, {pipeline_mode = #tpu.pipeline_mode<synchronous>, transform_indices = @transform_4, window_bounds = array<i64: 1, 256>}, {transform_indices = @transform_5, window_bounds = array<i64: 8, 256>}]} {
    %c0_i32 = arith.constant 0 : i32
    %0 = arith.cmpi eq, %arg1, %c0_i32 : i32
    %1 = arith.extui %0 : i1 to i32
    %c0_i32_0 = arith.constant 0 : i32
    %2 = arith.cmpi ne, %1, %c0_i32_0 : i32
    scf.if %2 {
      %cst_15 = arith.constant 0.000000e+00 : f32
      %21 = vector.broadcast %cst_15 : f32 to vector<8x256xf32>
      %c0_16 = arith.constant 0 : index
      %c0_17 = arith.constant 0 : index
      %22 = vector.load %arg8[%c0_16, %c0_17] : memref<8x256xf32, #tpu.memory_space<vmem>>, vector<8x256xf32>
      tpu.vector_store %arg8[%c0_16, %c0_17], %21 {strides = array<i32>} : memref<8x256xf32, #tpu.memory_space<vmem>>, vector<8x256xf32>,
    } else {
    }
    %c0 = arith.constant 0 : index
    %c0_1 = arith.constant 0 : index
    %c0_2 = arith.constant 0 : index
    %3 = vector.load %arg2[%c0, %c0_1, %c0_2] : memref<8x64x64xbf16, #tpu.memory_space<vmem>>, vector<8x64x64xbf16>
    %4 = vector.shape_cast %3 : vector<8x64x64xbf16> to vector<512x64xbf16>
    %c0_3 = arith.constant 0 : index
    %c0_4 = arith.constant 0 : index
    %5 = vector.load %arg4[%c0_3, %c0_4] : memref<64x256xbf16, #tpu.memory_space<vmem>>, vector<64x256xbf16>
    %cst = arith.constant dense<0.000000e+00> : vector<512x256xf32>
    %6 = tpu.matmul %4, %5, %cst {dimension_numbers = #tpu.dot_dimension_numbers<[1], [0], [0], [1], [0, 0, 1, 1], [], []>} : vector<512x64xbf16>, vector<64x256xbf16>, vector<512x256xf32> -> vector<512x256xf32>
    %7 = vector.shape_cast %6 : vector<512x256xf32> to vector<8x64x256xf32>
    %c0_5 = arith.constant 0 : index
    %c0_6 = arith.constant 0 : index
    %8 = vector.load %arg3[%c0_5, %c0_6] : memref<64x256xf32, #tpu.memory_space<vmem>>, vector<64x256xf32>
    %9 = vector.shape_cast %8 : vector<64x256xf32> to vector<1x64x256xf32>
    %10 = vector.broadcast %9 : vector<1x64x256xf32> to vector<8x64x256xf32>
    %11 = arith.addf %7, %10 : vector<8x64x256xf32>
    %cst_7 = arith.constant 0.000000e+00 : f32
    %12 = vector.broadcast %cst_7 : f32 to vector<8x64x256xf32>
    %13 = arith.maximumf %11, %12 : vector<8x64x256xf32>
    %c0_8 = arith.constant 0 : index
    %c0_9 = arith.constant 0 : index
    %14 = vector.load %arg8[%c0_8, %c0_9] : memref<8x256xf32, #tpu.memory_space<vmem>>, vector<8x256xf32>
    %cst_10 = arith.constant dense<0.000000e+00> : vector<8x256xf32>
    %15 = vector.multi_reduction <add>, %13, %cst_10 [1] : vector<8x64x256xf32> to vector<8x256xf32>
    %16 = arith.addf %14, %15 : vector<8x256xf32>
    %c0_11 = arith.constant 0 : index
    %c0_12 = arith.constant 0 : index
    %17 = vector.load %arg8[%c0_11, %c0_12] : memref<8x256xf32, #tpu.memory_space<vmem>>, vector<8x256xf32>
    tpu.vector_store %arg8[%c0_11, %c0_12], %16 {strides = array<i32>} : memref<8x256xf32, #tpu.memory_space<vmem>>, vector<8x256xf32>,
    %c0_i32_13 = arith.constant 0 : i32
    %18 = arith.cmpi eq, %arg1, %c0_i32_13 : i32
    %19 = arith.extui %18 : i1 to i32
    %c0_i32_14 = arith.constant 0 : i32
    %20 = arith.cmpi ne, %19, %c0_i32_14 : i32
    scf.if %20 {
      %c0_15 = arith.constant 0 : index
      %c0_16 = arith.constant 0 : index
      %21 = vector.load %arg8[%c0_15, %c0_16] : memref<8x256xf32, #tpu.memory_space<vmem>>, vector<8x256xf32>
      %22 = arith.truncf %21 : vector<8x256xf32> to vector<8x256xbf16>
      %c0_17 = arith.constant 0 : index
      %c0_18 = arith.constant 0 : index
      %23 = vector.load %arg5[%c0_17, %c0_18] : memref<256x256xbf16, #tpu.memory_space<vmem>>, vector<256x256xbf16>
      %cst_19 = arith.constant dense<0.000000e+00> : vector<8x256xf32>
      %24 = tpu.matmul %22, %23, %cst_19 {dimension_numbers = #tpu.dot_dimension_numbers<[1], [0], [0], [1], [0, 0, 1, 1], [], []>} : vector<8x256xbf16>, vector<256x256xbf16>, vector<8x256xf32> -> vector<8x256xf32>
      %c0_20 = arith.constant 0 : index
      %c0_21 = arith.constant 0 : index
      %25 = vector.load %arg6[%c0_20, %c0_21] : memref<1x256xf32, #tpu.memory_space<vmem>>, vector<1x256xf32>
      %26 = vector.broadcast %25 : vector<1x256xf32> to vector<8x256xf32>
      %27 = arith.addf %24, %26 : vector<8x256xf32>
      %28 = arith.mulf %27, %27 : vector<8x256xf32>
      %cst_22 = arith.constant dense<0.000000e+00> : vector<8xf32>
      %29 = vector.multi_reduction <add>, %28, %cst_22 [1] : vector<8x256xf32> to vector<8xf32>
      %30 = vector.shape_cast %29 : vector<8xf32> to vector<8x1xf32>
      %cst_23 = arith.constant 9.99999996E-13 : f32
      %31 = vector.broadcast %cst_23 : f32 to vector<8x1xf32>
      %32 = arith.addf %30, %31 : vector<8x1xf32>
      %33 = math.rsqrt %32 : vector<8x1xf32>
      %34 = vector.broadcast %33 : vector<8x1xf32> to vector<8x256xf32>
      %35 = arith.mulf %27, %34 : vector<8x256xf32>
      %c0_24 = arith.constant 0 : index
      %c0_25 = arith.constant 0 : index
      %36 = vector.load %arg7[%c0_24, %c0_25] : memref<8x256xf32, #tpu.memory_space<vmem>>, vector<8x256xf32>
      tpu.vector_store %arg7[%c0_24, %c0_25], %35 {strides = array<i32>} : memref<8x256xf32, #tpu.memory_space<vmem>>, vector<8x256xf32>,
    } else {
    }
    return
  }
  func.func @transform_0(%arg0: i32, %arg1: i32) -> (i32, i32, i32) {
    %c0_i32 = arith.constant 0 : i32
    %c0_i32_0 = arith.constant 0 : i32
    return %arg0, %arg1, %c0_i32 : i32, i32, i32
  }
  func.func @transform_1(%arg0: i32, %arg1: i32) -> (i32, i32) {
    %c0_i32 = arith.constant 0 : i32
    %c0_i32_0 = arith.constant 0 : i32
    return %arg1, %c0_i32 : i32, i32
  }
  func.func @transform_2(%arg0: i32, %arg1: i32) -> (i32, i32) {
    %c0_i32 = arith.constant 0 : i32
    %c0_i32_0 = arith.constant 0 : i32
    %c0_i32_1 = arith.constant 0 : i32
    return %c0_i32, %c0_i32_0 : i32, i32
  }
  func.func @transform_3(%arg0: i32, %arg1: i32) -> (i32, i32) {
    %c0_i32 = arith.constant 0 : i32
    %c0_i32_0 = arith.constant 0 : i32
    %c0_i32_1 = arith.constant 0 : i32
    return %c0_i32, %c0_i32_0 : i32, i32
  }
  func.func @transform_4(%arg0: i32, %arg1: i32) -> (i32, i32) {
    %c0_i32 = arith.constant 0 : i32
    %c0_i32_0 = arith.constant 0 : i32
    %c0_i32_1 = arith.constant 0 : i32
    return %c0_i32, %c0_i32_0 : i32, i32
  }
  func.func @transform_5(%arg0: i32, %arg1: i32) -> (i32, i32) {
    %c0_i32 = arith.constant 0 : i32
    %c0_i32_0 = arith.constant 0 : i32
    return %arg0, %c0_i32 : i32, i32
  }
}

</mosaic_0001>

<bundles_post_ra>
// kernel: image_prefix_model_forward.1
= control target key start
LH: loop header
LB: loop body
LE: loop exit
PB: predicated region body
PF: predicated region fallthrough
CT: control target
= control target key end

     0   :  { %10 = vsyncpa [#allocation4], 0  ;;  %s2946_s0 = inlined_call_operand.vmem [shape: bf16[16,64,64], index: 0, kind: input, shape index: {}]   ;;  %s2947_s1 = inlined_call_operand.vmem [shape: f32[64,256], index: 1, kind: input, shape index: {}]   ;;  %s2948_s2 = inlined_call_operand.vmem [shape: bf16[64,256], index: 2, kind: input, shape index: {}]   ;;  %s2949_s3 = inlined_call_operand.vmem [shape: bf16[256,256], index: 3, kind: input, shape index: {}]   ;;  %s2950_s4 = inlined_call_operand.vmem [shape: f32[1,256], index: 4, kind: input, shape index: {}]   ;;  %s2951_s5 = inlined_call_operand.hbm [shape: f32[16,256], index: 5, kind: output, shape index: {}]  }
   0x1   :  { %12 = vsyncpa [#allocation4 + $0x1], 0  ;;  %s2299_s18 = smov 0   ;;  %s2301_s19 = smov 0  }
   0x2   :  { %s2303_s20 = smov 0   ;;  %s2305_s21 = smov 0  }
   0x3   :  { %s2307_s22 = smov 0   ;;  %s2309_s23 = smov 0  }
   0x4 LB: > { %s1901_s24 = sadd.s32 4294967295, %s2265_s23   ;;  %s1902_s25 = sadd.s32 4294967294, %s2265_s23   ;;  %s2265_s23 = sphi %s2309_s23, %s18_s23   ;;  %s2261_s22 = sphi %s2307_s22, %s2958_s22   ;;  %s2257_s21 = sphi %s2305_s21, %s2957_s21   ;;  %s2253_s20 = sphi %s2303_s20, %s2956_s20   ;;  %s2249_s19 = sphi %s2301_s19, %s2955_s19   ;;  %s2245_s18 = sphi %s2299_s18, %s2954_s18  }
   0x5   : > { %s30_s26 = sadd.s32 1, %s2261_s22  ;;  %s154_s27 = sadd.s32 1, %s2253_s20 }
   0x6   : > { %p32_p0 = scmp.ge.s32.totalorder %s30_s26, 2  ;;  %p164_p1 = scmp.ne.s32.totalorder %s2253_s20, %s2249_s19 }
   0x7   : > { %p165_p2 = scmp.eq.s32.totalorder %s1901_s24, 1  ;;  %p170_p3 = scmp.ne.s32.totalorder %s2249_s19, %s2245_s18 }
   0x8   : > { %s2960_s26 = smov (%p32_p0, %s30_s26), 0  ;;  %p171_p5 = scmp.eq.s32.totalorder %s1902_s25, 1 }
   0x9   : > { %p2339_p4 = por %p165_p2, %p164_p1  ;;  %s151_s29 = ssub.s32 %s2261_s22, %s2960_s26 }
   0xa   : > { %p1906_p6 = scmp.ge.s32.totalorder %s2265_s23, 1  ;;  %p152_p7 = scmp.eq.s32.totalorder %s151_s29, 0 }
   0xb   : > { %p2346_p8 = por %p171_p5, %p170_p3  ;;  %p223_p9 = scmp.lt.s32.totalorder %s2265_s23, 3 }
   0xc   : > { %s2352_s6 = scalar_select %p152_p7, %s2253_s20, %s154_s27  }
   0xd   : > { %p224_p10 = pnand %p1906_p6, %p223_p9 }
   0xe   : > { %v2086_v0 = vld [vmem:[%s2948_s2 + $0x4] ss:$8 sps:$4 sm:$0xff] (!%p224_p10)   ;;  %s1908_s9 = sshll.u32 (!%p224_p10), %s2257_s21, 3  ;;  %v2088_v1 = vld [vmem:[%s2948_s2] ss:$8 sps:$4 sm:$0xff] (!%p224_p10)   ;;  %v2267_v2 = vmov (!%p224_p10), 0  }
   0xf   : > { %227 = sbr.rel (%p224_p10) target bundleno = 802 (0x322), region = 40  ;;  %689 = vmatprep.mubr.bf16.mxu0 (!%p224_p10), %v2267_v2  ;;  %p264_p11 = scmp.lt.s32.totalorder (!%p224_p10), %s1908_s9, 15  ;;  %859 = vmatprep.mubr.bf16.mxu1 (!%p224_p10), %v2267_v2  ;;  %v2089_v3 = vld [vmem:[%s2948_s2 + $0x14] ss:$8 sps:$4 sm:$0xff] (!%p224_p10)   ;;  %v2091_v4 = vld [vmem:[%s2948_s2 + $0x10] ss:$8 sps:$4 sm:$0xff] (!%p224_p10)  }
  0x10   : > { %657 = vmatprep.subr.bf16.mxu0 (!%p224_p10), %v2086_v0  ;;  %2022 = vmatprep.subr.bf16.mxu1 (!%p224_p10), %v2086_v0  ;;  %v2092_v5 = vld [vmem:[%s2948_s2 + $0x24] ss:$8 sps:$4 sm:$0xff] (!%p224_p10)   ;;  %v2094_v6 = vld [vmem:[%s2948_s2 + $0x20] ss:$8 sps:$4 sm:$0xff] (!%p224_p10)   ;;  %v2095_v7 = vld [vmem:[%s2948_s2 + $0x34] ss:$8 sps:$4 sm:$0xff] (!%p224_p10)  }
  0x11   : > { %658 = vmatpush1.bf16.msra.mxu0 (!%p224_p10), %v2088_v1  ;;  %2026 = vmatpush1.bf16.msra.mxu1 (!%p224_p10), %v2088_v1  ;;  %v2097_v8 = vld [vmem:[%s2948_s2 + $0x30] ss:$8 sps:$4 sm:$0xff] (!%p224_p10)   ;;  %vm560_vm0 = vcmask (!%p224_p10), 523264   ;;  %v2130_v41 = vld [vmem:[%s2949_s3] ss:$8 sps:$4 sm:$0xff] (!%p224_p10)   ;;  %vm1508_vm1 = vcmask (!%p224_p10), 1041409  }
  0x12   : > { %659 = vmatprep.subr.bf16.mxu0 (!%p224_p10), %v2089_v3  ;;  %2023 = vmatprep.subr.bf16.mxu1 (!%p224_p10), %v2089_v3  ;;  %v2132_v42 = vld [vmem:[%s2949_s3 + $0x4] ss:$8 sps:$4 sm:$0xff] (!%p224_p10)   ;;  %v2133_v43 = vld [vmem:[%s2949_s3 + $0x10] ss:$8 sps:$4 sm:$0xff] (!%p224_p10)   ;;  %v2135_v44 = vld [vmem:[%s2949_s3 + $0x14] ss:$8 sps:$4 sm:$0xff] (!%p224_p10)  }
  0x13   : > { %v2136_v45 = vld [vmem:[%s2949_s3 + $0x20] ss:$8 sps:$4 sm:$0xff] (!%p224_p10)   ;;  %v2138_v46 = vld [vmem:[%s2949_s3 + $0x24] ss:$8 sps:$4 sm:$0xff] (!%p224_p10)   ;;  %v2141_v47 = vld [vmem:[%s2949_s3 + $0x34] ss:$8 sps:$4 sm:$0xff] (!%p224_p10)  }
  0x14   : > { %v2139_v48 = vld [vmem:[%s2949_s3 + $0x30] ss:$8 sps:$4 sm:$0xff] (!%p224_p10)   ;;  %v2144_v49 = vld [vmem:[%s2949_s3 + $0x44] ss:$8 sps:$4 sm:$0xff] (!%p224_p10)   ;;  %v2142_v50 = vld [vmem:[%s2949_s3 + $0x40] ss:$8 sps:$4 sm:$0xff] (!%p224_p10)  }
  0x15   : > { %660 = vmatpush1.bf16.msra.mxu0 (!%p224_p10), %v2091_v4  ;;  %2027 = vmatpush1.bf16.msra.mxu1 (!%p224_p10), %v2091_v4  ;;  %v2147_v51 = vld [vmem:[%s2949_s3 + $0x54] ss:$8 sps:$4 sm:$0xff] (!%p224_p10)   ;;  %v2145_v52 = vld [vmem:[%s2949_s3 + $0x50] ss:$8 sps:$4 sm:$0xff] (!%p224_p10)   ;;  %v2148_v53 = vld [vmem:[%s2949_s3 + $0x60] ss:$8 sps:$4 sm:$0xff] (!%p224_p10)  }
  0x16   : > { %s2962_s9 = smov (!%p264_p11, %s1908_s9), 15  ;;  %661 = vmatprep.subr.bf16.mxu0 %v2092_v5  ;;  %2024 = vmatprep.subr.bf16.mxu1 %v2092_v5  ;;  %v2150_v54 = vld [vmem:[%s2949_s3 + $0x64] ss:$8 sps:$4 sm:$0xff]   ;;  %v2153_v55 = vld [vmem:[%s2949_s3 + $0x74] ss:$8 sps:$4 sm:$0xff]   ;;  %vm1510_vm2 = vcmask 1042434  }
  0x17   : > { %s2020_s24 = sshll.u32 %s2962_s9, 5  ;;  %v2151_v56 = vld [vmem:[%s2949_s3 + $0x70] ss:$8 sps:$4 sm:$0xff]   ;;  %v2156_v57 = vld [vmem:[%s2949_s3 + $0x84] ss:$8 sps:$4 sm:$0xff]   ;;  %vm1512_vm3 = vcmask 1043459  }
  0x18   : > { %s2375_s29 = scalar_lea.vmem %s2946_s0, %s2020_s24  ;;  %v2154_v58 = vld [vmem:[%s2949_s3 + $0x80] ss:$8 sps:$4 sm:$0xff]   ;;  %v2159_v59 = vld [vmem:[%s2949_s3 + $0x94] ss:$8 sps:$4 sm:$0xff]   ;;  %v2157_v60 = vld [vmem:[%s2949_s3 + $0x90] ss:$8 sps:$4 sm:$0xff]  }
  0x19   : > { %662 = vmatpush1.bf16.msra.mxu0 %v2094_v6  ;;  %2028 = vmatpush1.bf16.msra.mxu1 %v2094_v6  ;;  %v2098_v9 = vld [vmem:[%s2375_s29] sm:$0xff]   ;;  %v2100_v10 = vld [vmem:[%s2375_s29 + $0x88] sm:$0xff]   ;;  %v2102_v12 = vld [vmem:[%s2375_s29 + $0x90] sm:$0xff]   ;;  %vm1514_vm4 = vcmask 1044484   ;;  %vm1516_vm5 = vcmask 1045509   ;;  %vm1518_vm6 = vcmask 1046534  }
  0x1a   : > { %663 = vmatprep.subr.bf16.mxu0 %v2095_v7  ;;  %2025 = vmatprep.subr.bf16.mxu1 %v2095_v7  ;;  %v2099_v11 = vld [vmem:[%s2375_s29 + $0x8] sm:$0xff]   ;;  %v2101_v13 = vld [vmem:[%s2375_s29 + $0x10] sm:$0xff]   ;;  %v2104_v14 = vld [vmem:[%s2375_s29 + $0x98] sm:$0xff]   ;;  %vm1520_vm7 = vcmask 1047559   ;;  %s259_s27 = sand.u32 1, %s2249_s19   ;;  %s2021_s7 = sshll.u32 %s2257_s21, 8 }
  0x1b   : > { %v2103_v15 = vld [vmem:[%s2375_s29 + $0x18] sm:$0xff]   ;;  %v2106_v16 = vld [vmem:[%s2375_s29 + $0xa0] sm:$0xff]   ;;  %v2108_v18 = vld [vmem:[%s2375_s29 + $0xa8] sm:$0xff]   ;;  %s2899_s12 = scalar_lea.hbm %s2951_s5, %s2021_s7  ;;  %s1799_s13 = scalar_lea.sflag [#allocation4], %s259_s27 }
  0x1c   : > { %v2105_v17 = vld [vmem:[%s2375_s29 + $0x20] sm:$0xff]   ;;  %v2107_v19 = vld [vmem:[%s2375_s29 + $0x28] sm:$0xff]   ;;  %v2110_v20 = vld [vmem:[%s2375_s29 + $0xb0] sm:$0xff]   ;;  %s2268_s21 = smov [#allocation3]  }
  0x1d   : > { %664 = vmatpush1.bf16.msra.mxu0 %v2097_v8  ;;  %2029 = vmatpush1.bf16.msra.mxu1 %v2097_v8  ;;  %v2109_v21 = vld [vmem:[%s2375_s29 + $0x30] sm:$0xff]   ;;  %v2112_v22 = vld [vmem:[%s2375_s29 + $0xb8] sm:$0xff]   ;;  %v2114_v24 = vld [vmem:[%s2375_s29 + $0xc0] sm:$0xff]   ;;  %s2191_s15 = sshll.u32 %s2268_s21, 4  ;;  %s2192_s15 = int_to_ptr.vmem [resolvable:$false] %s2191_s15 }
  0x1e   : > { %v2111_v23 = vld [vmem:[%s2375_s29 + $0x38] sm:$0xff]   ;;  %v2113_v25 = vld [vmem:[%s2375_s29 + $0x40] sm:$0xff]   ;;  %v2116_v26 = vld [vmem:[%s2375_s29 + $0xc8] sm:$0xff]   ;;  %1746 = vmatprep.subr.bf16.mxu1 %v2132_v42  ;;  %s2193_s16 = scalar_lea.vmem %s2192_s15, 512 }
  0x1f   : > { %v2115_v27 = vld [vmem:[%s2375_s29 + $0x48] sm:$0xff]   ;;  %v2118_v28 = vld [vmem:[%s2375_s29 + $0xd0] sm:$0xff]   ;;  %v2120_v30 = vld [vmem:[%s2375_s29 + $0xd8] sm:$0xff]  }
  0x20   : > { %1951 = vmatmul.mubr.msk.bf16.vlgmr.msra.gmra.mrb[0].mxu0 %vm560_vm0, %v2098_v9  ;;  %1968 = vmatmul.mubr.msk.bf16.vlgmr.msra.gmra.mrb[0].mxu1 %vm560_vm0, %v2100_v10  ;;  %v2117_v29 = vld [vmem:[%s2375_s29 + $0x50] sm:$0xff]   ;;  %v2119_v31 = vld [vmem:[%s2375_s29 + $0x58] sm:$0xff]   ;;  %v2122_v32 = vld [vmem:[%s2375_s29 + $0xe0] sm:$0xff]  }
  0x21   : > { %699 = vmatprep.mubr.bf16.mxu0 %v2267_v2  ;;  %869 = vmatprep.mubr.bf16.mxu1 %v2267_v2  ;;  %v2121_v33 = vld [vmem:[%s2375_s29 + $0x60] sm:$0xff]   ;;  %v2124_v34 = vld [vmem:[%s2375_s29 + $0xe8] sm:$0xff]   ;;  %v2126_v36 = vld [vmem:[%s2375_s29 + $0xf0] sm:$0xff]  }
  0x22   : > { %v2123_v35 = vld [vmem:[%s2375_s29 + $0x68] sm:$0xff]   ;;  %v2125_v37 = vld [vmem:[%s2375_s29 + $0x70] sm:$0xff]   ;;  %v2128_v38 = vld [vmem:[%s2375_s29 + $0xf8] sm:$0xff]   ;;  %1747 = vmatpush1.bf16.msra.mxu1 %v2130_v41 }
  0x23   : > { %v2127_v39 = vld [vmem:[%s2375_s29 + $0x78] sm:$0xff]   ;;  %v2129_v40 = vld [vmem:[%s2375_s29 + $0x80] sm:$0xff]   ;;  %1748 = vmatprep.subr.bf16.mxu1 %v2135_v44  ;;  %v2548_v62 = vld [vmem:[%s2947_s1 + $0x8] sm:$0xff]  ;;  %s1907_s29 = sshll.u32 %s259_s27, 4 }
  0x24   : > { %v2543_v61 = vld [vmem:[%s2947_s1] sm:$0xff]  ;;  %v2553_v0 = vld [vmem:[%s2947_s1 + $0x10] sm:$0xff]  ;;  %v2561_v4 = vld [vmem:[%s2947_s1 + $0x18] sm:$0xff]  ;;  %s261_s8 = scalar_lea.vmem [#allocation3], %s1907_s29 }
  0x25   : > { %v2610_v42 = vld [vmem:[%s2947_s1 + $0x40] sm:$0xff]  ;;  %s1813_s10 = sshll.u32 %s261_s8, 4  ;;  %s2901_s10 = int_to_ptr.vmem [resolvable:$true] %s1813_s10 }
  0x26   : > { %1749 = vmatpush1.bf16.msra.mxu1 %v2133_v43  ;;  %v2162_v43 = vld [vmem:[%s2949_s3 + $0xa4] ss:$8 sps:$4 sm:$0xff]   ;;  %s2187_s14 = scalar_lea.vmem %s2901_s10, 256  ;;  %p2194_p1 = scmp.lt.s32.totalorder %s2901_s10, %s2192_s15 }
  0x27   : > { %1750 = vmatprep.subr.bf16.mxu1 %v2138_v46  ;;  %p2188_p12 = scmp.ne.s32.totalorder %s2901_s10, %s2187_s14  ;;  %p2195_p2 = scmp.lt.s32.totalorder %s2193_s16, %s2187_s14 }
  0x28   : > { %1952 = vmatmul.mubr.msk.bf16.gmra.mrb[4].mxu0 %vm560_vm0, %v2099_v11  ;;  %1969 = vmatmul.mubr.msk.bf16.gmra.mrb[4].mxu1 %vm560_vm0, %v2102_v12 }
  0x29   : > { %709 = vmatprep.mubr.bf16.mxu0 %v2267_v2  ;;  %879 = vmatprep.mubr.bf16.mxu1 %v2267_v2  ;;  %p2189_p13 = pnand %p2188_p12, %p2339_p4  ;;  %p2196_p3 = por %p2195_p2, %p2194_p1 }
  0x2a   : > { %1751 = vmatpush1.bf16.msra.mxu1 %v2136_v45  ;;  %v2618_v45 = vld [vmem:[%s2947_s1 + $0x48] sm:$0xff] }
  0x2b   : > { %1752 = vmatprep.subr.bf16.mxu1 %v2141_v47  ;;  %p2190_p0 = pneg %p2189_p13 }
  0x2d   : > { %p2197_p5 = pnand %p2196_p3, %p2190_p0 }
  0x2e   : > { %1753 = vmatpush1.bf16.msra.mxu1 %v2139_v48  ;;  %v2623_v48 = vld [vmem:[%s2947_s1 + $0x50] sm:$0xff] }
  0x2f   : > { %1754 = vmatprep.subr.bf16.mxu1 %v2144_v49 }
  0x30   : > { %1953 = vmatmul.mubr.msk.bf16.gmra.mrb[8].mxu0 %vm560_vm0, %v2101_v13  ;;  %1970 = vmatmul.mubr.msk.bf16.gmra.mrb[8].mxu1 %vm560_vm0, %v2104_v14 }
  0x31   : > { %719 = vmatprep.mubr.bf16.mxu0 %v2267_v2  ;;  %889 = vmatprep.mubr.bf16.mxu1 %v2267_v2 }
  0x32   : > { %1755 = vmatpush1.bf16.msra.mxu1 %v2142_v50 }
  0x33   : > { %1756 = vmatprep.subr.bf16.mxu1 %v2147_v51 }
  0x36   : > { %1757 = vmatpush1.bf16.msra.mxu1 %v2145_v52  ;;  %v2631_v52 = vld [vmem:[%s2947_s1 + $0x58] sm:$0xff] }
  0x37   : > { %1758 = vmatprep.subr.bf16.mxu1 %v2150_v54 }
  0x38   : > { %1954 = vmatmul.mubr.msk.bf16.gmra.mrb[12].mxu0 %vm560_vm0, %v2103_v15  ;;  %1971 = vmatmul.mubr.msk.bf16.gmra.mrb[12].mxu1 %vm560_vm0, %v2106_v16 }
  0x39   : > { %729 = vmatprep.mubr.bf16.mxu0 %v2267_v2  ;;  %899 = vmatprep.mubr.bf16.mxu1 %v2267_v2 }
  0x3a   : > { %1759 = vmatpush1.bf16.msra.mxu1 %v2148_v53 }
  0x3b   : > { %1760 = vmatprep.subr.bf16.mxu1 %v2153_v55 }
  0x3e   : > { %1761 = vmatpush1.bf16.msra.mxu1 %v2151_v56 }
  0x3f   : > { %1762 = vmatprep.subr.bf16.mxu1 %v2156_v57 }
  0x40   : > { %1955 = vmatmul.mubr.msk.bf16.gmra.mrb[16].mxu0 %vm560_vm0, %v2105_v17  ;;  %1972 = vmatmul.mubr.msk.bf16.gmra.mrb[16].mxu1 %vm560_vm0, %v2108_v18  ;;  %v2575_v17 = vld [vmem:[%s2947_s1 + $0x20] sm:$0xff] }
  0x41   : > { %739 = vmatprep.mubr.bf16.mxu0 %v2267_v2  ;;  %909 = vmatprep.mubr.bf16.mxu1 %v2267_v2 }
  0x42   : > { %1763 = vmatpush1.bf16.msra.mxu1 %v2154_v58 }
  0x43   : > { %1764 = vmatprep.subr.bf16.mxu1 %v2159_v59 }
  0x46   : > { %1765 = vmatpush1.bf16.msra.mxu1 %v2157_v60 }
  0x47   : > { %1766 = vmatprep.subr.bf16.mxu1 %v2162_v43 }
  0x48   : > { %1956 = vmatmul.mubr.msk.bf16.gmra.mrb[20].mxu0 %vm560_vm0, %v2107_v19  ;;  %1973 = vmatmul.mubr.msk.bf16.gmra.mrb[20].mxu1 %vm560_vm0, %v2110_v20  ;;  %v2580_v19 = vld [vmem:[%s2947_s1 + $0x28] sm:$0xff] }
  0x49   : > { %749 = vmatprep.mubr.bf16.mxu0 %v2267_v2  ;;  %919 = vmatprep.mubr.bf16.mxu1 %v2267_v2 }
  0x50   : > { %1957 = vmatmul.mubr.msk.bf16.gmra.mrb[24].mxu0 %vm560_vm0, %v2109_v21  ;;  %1974 = vmatmul.mubr.msk.bf16.gmra.mrb[24].mxu1 %vm560_vm0, %v2112_v22  ;;  %v2585_v22 = vld [vmem:[%s2947_s1 + $0x30] sm:$0xff] }
  0x51   : > { %759 = vmatprep.mubr.bf16.mxu0 %v2267_v2  ;;  %929 = vmatprep.mubr.bf16.mxu1 %v2267_v2 }
  0x58   : > { %1958 = vmatmul.mubr.msk.bf16.gmra.mrb[28].mxu0 %vm560_vm0, %v2111_v23  ;;  %1975 = vmatmul.mubr.msk.bf16.gmra.mrb[28].mxu1 %vm560_vm0, %v2114_v24 }
  0x59   : > { %769 = vmatprep.mubr.bf16.mxu0 %v2267_v2  ;;  %939 = vmatprep.mubr.bf16.mxu1 %v2267_v2 }
  0x60   : > { %1959 = vmatmul.mubr.msk.bf16.gmra.mrb[32].mxu0 %vm560_vm0, %v2113_v25  ;;  %1976 = vmatmul.mubr.msk.bf16.gmra.mrb[32].mxu1 %vm560_vm0, %v2116_v26  ;;  %v2593_v26 = vld [vmem:[%s2947_s1 + $0x38] sm:$0xff] }
  0x61   : > { %779 = vmatprep.mubr.bf16.mxu0 %v2267_v2  ;;  %949 = vmatprep.mubr.bf16.mxu1 %v2267_v2 }
  0x68   : > { %1960 = vmatmul.mubr.msk.bf16.gmra.mrb[36].mxu0 %vm560_vm0, %v2115_v27  ;;  %1977 = vmatmul.mubr.msk.bf16.gmra.mrb[36].mxu1 %vm560_vm0, %v2118_v28 }
  0x69   : > { %789 = vmatprep.mubr.bf16.mxu0 %v2267_v2  ;;  %959 = vmatprep.mubr.bf16.mxu1 %v2267_v2 }
  0x70   : > { %1961 = vmatmul.mubr.msk.bf16.gmra.mrb[40].mxu0 %vm560_vm0, %v2117_v29  ;;  %1978 = vmatmul.mubr.msk.bf16.gmra.mrb[40].mxu1 %vm560_vm0, %v2120_v30 }
  0x71   : > { %799 = vmatprep.mubr.bf16.mxu0 %v2267_v2  ;;  %969 = vmatprep.mubr.bf16.mxu1 %v2267_v2 }
  0x78   : > { %1962 = vmatmul.mubr.msk.bf16.gmra.mrb[44].mxu0 %vm560_vm0, %v2119_v31  ;;  %1979 = vmatmul.mubr.msk.bf16.gmra.mrb[44].mxu1 %vm560_vm0, %v2122_v32 }
  0x79   : > { %809 = vmatprep.mubr.bf16.mxu0 %v2267_v2  ;;  %979 = vmatprep.mubr.bf16.mxu1 %v2267_v2 }
  0x80   : > { %1963 = vmatmul.mubr.msk.bf16.gmra.mrb[48].mxu0 %vm560_vm0, %v2121_v33  ;;  %1980 = vmatmul.mubr.msk.bf16.gmra.mrb[48].mxu1 %vm560_vm0, %v2124_v34 }
  0x81   : > { %819 = vmatprep.mubr.bf16.mxu0 %v2267_v2  ;;  %989 = vmatprep.mubr.bf16.mxu1 %v2267_v2 }
  0x88   : > { %1964 = vmatmul.mubr.msk.bf16.gmra.mrb[52].mxu0 %vm560_vm0, %v2123_v35  ;;  %1981 = vmatmul.mubr.msk.bf16.gmra.mrb[52].mxu1 %vm560_vm0, %v2126_v36 }
  0x89   : > { %829 = vmatprep.mubr.bf16.mxu0 %v2267_v2  ;;  %999 = vmatprep.mubr.bf16.mxu1 %v2267_v2 }
  0x90   : > { %1965 = vmatmul.mubr.msk.bf16.gmra.mrb[56].mxu0 %vm560_vm0, %v2125_v37  ;;  %1982 = vmatmul.mubr.msk.bf16.gmra.mrb[56].mxu1 %vm560_vm0, %v2128_v38 }
  0x91   : > { %839 = vmatprep.mubr.bf16.mxu0 %v2267_v2 }
  0x98   : > { %1966 = vmatmul.mubr.msk.bf16.gmra.mrb[60].mxu0 %vm560_vm0, %v2127_v39  ;;  %v2160_v39 = vld [vmem:[%s2949_s3 + $0xa0] ss:$8 sps:$4 sm:$0xff]  }
  0x99   : > { %849 = vmatprep.mubr.bf16.mxu0 %v2267_v2  ;;  %1767 = vmatpush1.bf16.msra.mxu1 %v2160_v39 }
  0xa0   : > { %1967 = vmatmul.mubr.msk.bf16.gmra.mrb[64].mxu0 %vm560_vm0, %v2129_v40 }
  0xf3   : > { %v691_v63 = vpop.f32.mrb[0].mxu0  ;;  %v2555_v1 = vpop.f32.mrb[0].mxu1 }
  0xf4   : > { %v1026_v2 = vadd.f32 %v2543_v61, %v691_v63  ;;  %v693_v3 = vpop.f32.mrb[1].mxu0  ;;  %v2563_v5 = vpop.f32.mrb[1].mxu1 }
  0xf5   : > { %v1027_v6 = vadd.f32 %v2548_v62, %v693_v3  ;;  %v695_v7 = vpop.f32.mrb[2].mxu0  ;;  %v2566_v8 = vpop.f32.mrb[2].mxu1  ;;  %v2165_v3 = vld [vmem:[%s2949_s3 + $0xb4] ss:$8 sps:$4 sm:$0xff]  }
  0xf6   : > { %v1028_v9 = vadd.f32 %v2553_v0, %v695_v7  ;;  %v697_v10 = vpop.f32.mrb[3].mxu0  ;;  %v2569_v11 = vpop.f32.mrb[3].mxu1  ;;  %v1154_v13 = vmax.f32 %v1026_v2, 0.0  ;;  %1768 = vmatprep.subr.bf16.mxu1 %v2165_v3 }
  0xf7   : > { %v1029_v12 = vadd.f32 %v2561_v4, %v697_v10  ;;  %v1155_v15 = vmax.f32 %v1027_v6, 0.0 }
  0xf8   : > { %v1156_v14 = vmax.f32 %v1028_v9, 0.0  ;;  %v2163_v9 = vld [vmem:[%s2949_s3 + $0xb0] ss:$8 sps:$4 sm:$0xff]  }
  0xf9   : > { %v1157_v16 = vmax.f32 %v1029_v12, 0.0  ;;  %1769 = vmatpush1.bf16.msra.mxu1 %v2163_v9 }
  0xfa   : > { %v1284_v18 = vadd.f32 %v1156_v14, %v1154_v13  ;;  %v2651_v13 = vld [vmem:[%s2947_s1 + $0x60] sm:$0xff] }
  0xfb   : > { %v1297_v20 = vadd.f32 %v1157_v16, %v1155_v15  ;;  %v701_v21 = vpop.f32.mrb[4].mxu0  ;;  %v2587_v23 = vpop.f32.mrb[4].mxu1  ;;  %v2656_v15 = vld [vmem:[%s2947_s1 + $0x68] sm:$0xff] }
  0xfc   : > { %v1030_v24 = vadd.f32 %v2575_v17, %v701_v21  ;;  %v703_v25 = vpop.f32.mrb[5].mxu0  ;;  %v2595_v27 = vpop.f32.mrb[5].mxu1 }
  0xfd   : > { %v1031_v28 = vadd.f32 %v2580_v19, %v703_v25  ;;  %v705_v29 = vpop.f32.mrb[6].mxu0  ;;  %v2598_v30 = vpop.f32.mrb[6].mxu1 }
  0xfe   : > { %v1158_v31 = vmax.f32 %v1030_v24, 0.0  ;;  %v1032_v32 = vadd.f32 %v2585_v22, %v705_v29  ;;  %v707_v33 = vpop.f32.mrb[7].mxu0  ;;  %v2601_v34 = vpop.f32.mrb[7].mxu1  ;;  %v2168_v24 = vld [vmem:[%s2949_s3 + $0xc4] ss:$8 sps:$4 sm:$0xff]   ;;  %v2670_v29 = vld [vmem:[%s2947_s1 + $0x78] sm:$0xff] }
  0xff   : > { %v1159_v35 = vmax.f32 %v1031_v28, 0.0  ;;  %v1033_v36 = vadd.f32 %v2593_v26, %v707_v33  ;;  %v2166_v33 = vld [vmem:[%s2949_s3 + $0xc0] ss:$8 sps:$4 sm:$0xff]   ;;  %1770 = vmatprep.subr.bf16.mxu1 %v2168_v24  ;;  %v2177_v24 = vld [vmem:[%s2949_s3 + $0xf4] ss:$8 sps:$4 sm:$0xff]  }
 0x100   : > { %v1285_v37 = vadd.f32 %v1284_v18, %v1158_v31  ;;  %v1160_v38 = vmax.f32 %v1032_v32, 0.0  ;;  %1771 = vmatpush1.bf16.msra.mxu1 %v2166_v33 }
 0x101   : > { %v1298_v40 = vadd.f32 %v1297_v20, %v1159_v35  ;;  %v1161_v41 = vmax.f32 %v1033_v36, 0.0  ;;  %v2661_v20 = vld [vmem:[%s2947_s1 + $0x70] sm:$0xff] }
 0x102   : > { %v1286_v44 = vadd.f32 %v1285_v37, %v1160_v38 }
 0x103   : > { %v1299_v46 = vadd.f32 %v1298_v40, %v1161_v41  ;;  %v711_v47 = vpop.f32.mrb[8].mxu0  ;;  %v2625_v49 = vpop.f32.mrb[8].mxu1 }
 0x104   : > { %v1034_v50 = vadd.f32 %v2610_v42, %v711_v47  ;;  %v713_v51 = vpop.f32.mrb[9].mxu0  ;;  %v2633_v53 = vpop.f32.mrb[9].mxu1 }
 0x105   : > { %v1035_v54 = vadd.f32 %v2618_v45, %v713_v51  ;;  %v715_v55 = vpop.f32.mrb[10].mxu0  ;;  %v2636_v56 = vpop.f32.mrb[10].mxu1 }
 0x106   : > { %v1162_v57 = vmax.f32 %v1034_v50, 0.0  ;;  %v1036_v58 = vadd.f32 %v2623_v48, %v715_v55  ;;  %v717_v59 = vpop.f32.mrb[11].mxu0  ;;  %v2639_v60 = vpop.f32.mrb[11].mxu1  ;;  %v2171_v55 = vld [vmem:[%s2949_s3 + $0xd4] ss:$8 sps:$4 sm:$0xff]  }
 0x107   : > { %v1163_v63 = vmax.f32 %v1035_v54, 0.0  ;;  %v1037_v2 = vadd.f32 %v2631_v52, %v717_v59  ;;  %1772 = vmatprep.subr.bf16.mxu1 %v2171_v55 }
 0x108   : > { %v1287_v6 = vadd.f32 %v1286_v44, %v1162_v57  ;;  %v1164_v7 = vmax.f32 %v1036_v58, 0.0 }
 0x109   : > { %v1300_v10 = vadd.f32 %v1299_v46, %v1163_v63  ;;  %v1165_v12 = vmax.f32 %v1037_v2, 0.0  ;;  %v2169_v63 = vld [vmem:[%s2949_s3 + $0xd0] ss:$8 sps:$4 sm:$0xff]  }
 0x10a   : > { %v1288_v14 = vadd.f32 %v1287_v6, %v1164_v7  ;;  %v2174_v7 = vld [vmem:[%s2949_s3 + $0xe4] ss:$8 sps:$4 sm:$0xff]   ;;  %1773 = vmatpush1.bf16.msra.mxu1 %v2169_v63 }
 0x10b   : > { %v1301_v16 = vadd.f32 %v1300_v10, %v1165_v12  ;;  %v721_v18 = vpop.f32.mrb[12].mxu0  ;;  %v891_v21 = vpop.f32.mrb[12].mxu1  ;;  %v2172_v12 = vld [vmem:[%s2949_s3 + $0xe0] ss:$8 sps:$4 sm:$0xff]   ;;  %1774 = vmatprep.subr.bf16.mxu1 %v2174_v7 }
 0x10c   : > { %v1038_v25 = vadd.f32 %v2651_v13, %v721_v18  ;;  %v723_v28 = vpop.f32.mrb[13].mxu0  ;;  %v1106_v31 = vadd.f32 %v2543_v61, %v891_v21  ;;  %v893_v32 = vpop.f32.mrb[13].mxu1 }
 0x10d   : > { %v1039_v35 = vadd.f32 %v2656_v15, %v723_v28  ;;  %v725_v36 = vpop.f32.mrb[14].mxu0  ;;  %v1107_v37 = vadd.f32 %v2548_v62, %v893_v32  ;;  %v895_v38 = vpop.f32.mrb[14].mxu1 }
 0x10e   : > { %v1166_v39 = vmax.f32 %v1038_v25, 0.0  ;;  %v1040_v40 = vadd.f32 %v2661_v20, %v725_v36  ;;  %v727_v41 = vpop.f32.mrb[15].mxu0  ;;  %v1234_v43 = vmax.f32 %v1106_v31, 0.0  ;;  %v1108_v44 = vadd.f32 %v2553_v0, %v895_v38  ;;  %v897_v46 = vpop.f32.mrb[15].mxu1  ;;  %1775 = vmatpush1.bf16.msra.mxu1 %v2172_v12 }
 0x10f   : > { %v1167_v47 = vmax.f32 %v1039_v35, 0.0  ;;  %v1041_v50 = vadd.f32 %v2670_v29, %v727_v41  ;;  %v1235_v51 = vmax.f32 %v1107_v37, 0.0  ;;  %v1109_v54 = vadd.f32 %v2561_v4, %v897_v46  ;;  %1776 = vmatprep.subr.bf16.mxu1 %v2177_v24 }
 0x110   : > { %v1289_v57 = vadd.f32 %v1288_v14, %v1166_v39  ;;  %v1168_v58 = vmax.f32 %v1040_v40, 0.0  ;;  %v1236_v59 = vmax.f32 %v1108_v44, 0.0 }
 0x111   : > { %v1302_v2 = vadd.f32 %v1301_v16, %v1167_v47  ;;  %v1169_v3 = vmax.f32 %v1041_v50, 0.0  ;;  %v1237_v6 = vmax.f32 %v1109_v54, 0.0 }
 0x112   : > { %v2691_v9 = vadd.f32 %v1289_v57, %v1168_v58  ;;  %v1414_v10 = vadd.f32 %v1236_v59, %v1234_v43  ;;  %v2175_v43 = vld [vmem:[%s2949_s3 + $0xf0] ss:$8 sps:$4 sm:$0xff]  }
 0x113   : > { %v2696_v14 = vadd.f32 %v1302_v2, %v1169_v3  ;;  %v731_v18 = vpop.f32.mrb[16].mxu0  ;;  %v1427_v21 = vadd.f32 %v1237_v6, %v1235_v51  ;;  %v901_v16 = vpop.f32.mrb[16].mxu1  ;;  %1777 = vmatpush1.bf16.msra.mxu1 %v2175_v43 }
 0x114   : > { %v1042_v25 = vadd.f32 %v2543_v61, %v731_v18  ;;  %v733_v28 = vpop.f32.mrb[17].mxu0  ;;  %v1110_v31 = vadd.f32 %v2575_v17, %v901_v16  ;;  %v903_v32 = vpop.f32.mrb[17].mxu1 }
 0x115   : > { %v1043_v33 = vadd.f32 %v2548_v62, %v733_v28  ;;  %v735_v35 = vpop.f32.mrb[18].mxu0  ;;  %v1111_v36 = vadd.f32 %v2580_v19, %v903_v32  ;;  %v905_v37 = vpop.f32.mrb[18].mxu1 }
 0x116   : > { %v1044_v38 = vadd.f32 %v2553_v0, %v735_v35  ;;  %v737_v39 = vpop.f32.mrb[19].mxu0  ;;  %v1238_v40 = vmax.f32 %v1110_v31, 0.0  ;;  %v907_v41 = vpop.f32.mrb[19].mxu1  ;;  %v1170_v47 = vmax.f32 %v1042_v25, 0.0  ;;  %v1112_v54 = vadd.f32 %v2585_v22, %v905_v37 }
 0x117   : > { %v1045_v44 = vadd.f32 %v2561_v4, %v737_v39  ;;  %v1239_v46 = vmax.f32 %v1111_v36, 0.0  ;;  %v1171_v55 = vmax.f32 %v1043_v33, 0.0  ;;  %v1113_v59 = vadd.f32 %v2593_v26, %v907_v41 }
 0x118   : > { %v1172_v50 = vmax.f32 %v1044_v38, 0.0  ;;  %v1415_v51 = vadd.f32 %v1414_v10, %v1238_v40  ;;  %v1240_v2 = vmax.f32 %v1112_v54, 0.0  ;;  %v1291_v35 = vrot.slane %v2691_v9, 4 }
 0x119   : > { %v1173_v57 = vmax.f32 %v1045_v44, 0.0  ;;  %v1428_v58 = vadd.f32 %v1427_v21, %v1239_v46  ;;  %v1241_v7 = vmax.f32 %v1113_v59, 0.0  ;;  %v1304_v41 = vrot.slane %v2696_v14, 4 }
 0x11a   : > { %v1310_v63 = vadd.f32 %v1172_v50, %v1170_v47  ;;  %v1416_v24 = vadd.f32 %v1415_v51, %v1240_v2 }
 0x11b   : > { %v1323_v3 = vadd.f32 %v1173_v57, %v1171_v55  ;;  %v741_v6 = vpop.f32.mrb[20].mxu0  ;;  %v911_v12 = vpop.f32.mrb[20].mxu1  ;;  %v1429_v21 = vadd.f32 %v1428_v58, %v1241_v7 }
 0x11c   : > { %v1046_v18 = vadd.f32 %v2575_v17, %v741_v6  ;;  %v743_v16 = vpop.f32.mrb[21].mxu0  ;;  %v1114_v10 = vadd.f32 %v2610_v42, %v911_v12  ;;  %v913_v25 = vpop.f32.mrb[21].mxu1 }
 0x11d   : > { %v1047_v28 = vadd.f32 %v2580_v19, %v743_v16  ;;  %v745_v31 = vpop.f32.mrb[22].mxu0  ;;  %v1115_v32 = vadd.f32 %v2618_v45, %v913_v25  ;;  %v915_v33 = vpop.f32.mrb[22].mxu1 }
 0x11e   : > { %v1174_v36 = vmax.f32 %v1046_v18, 0.0  ;;  %v1048_v37 = vadd.f32 %v2585_v22, %v745_v31  ;;  %v747_v38 = vpop.f32.mrb[23].mxu0  ;;  %v1242_v39 = vmax.f32 %v1114_v10, 0.0  ;;  %v917_v40 = vpop.f32.mrb[23].mxu1  ;;  %v1116_v54 = vadd.f32 %v2623_v48, %v915_v33 }
 0x11f   : > { %v1175_v43 = vmax.f32 %v1047_v28, 0.0  ;;  %v1049_v44 = vadd.f32 %v2593_v26, %v747_v38  ;;  %v1243_v46 = vmax.f32 %v1115_v32, 0.0  ;;  %v1117_v59 = vadd.f32 %v2631_v52, %v917_v40 }
 0x120   : > { %v1311_v47 = vadd.f32 %v1310_v63, %v1174_v36  ;;  %v1176_v50 = vmax.f32 %v1048_v37, 0.0  ;;  %v1417_v51 = vadd.f32 %v1416_v24, %v1242_v39  ;;  %v1244_v6 = vmax.f32 %v1116_v54, 0.0 }
 0x121   : > { %v1324_v55 = vadd.f32 %v1323_v3, %v1175_v43  ;;  %v1177_v57 = vmax.f32 %v1049_v44, 0.0  ;;  %v1430_v58 = vadd.f32 %v1429_v21, %v1243_v46  ;;  %v1245_v18 = vmax.f32 %v1117_v59, 0.0 }
 0x122   : > { %v1312_v2 = vadd.f32 %v1311_v47, %v1176_v50  ;;  %v1292_v10 = vadd.f32 %v1291_v35, %v2691_v9  ;;  %v1418_v28 = vadd.f32 %v1417_v51, %v1244_v6  ;;  %v1305_v3 = vadd.f32 %v1304_v41, %v2696_v14 }
 0x123   : > { %v1325_v7 = vadd.f32 %v1324_v55, %v1177_v57  ;;  %v751_v12 = vpop.f32.mrb[24].mxu0  ;;  %v921_v16 = vpop.f32.mrb[24].mxu1  ;;  %v1431_v33 = vadd.f32 %v1430_v58, %v1245_v18 }
 0x124   : > { %v1050_v25 = vadd.f32 %v2610_v42, %v751_v12  ;;  %v753_v63 = vpop.f32.mrb[25].mxu0  ;;  %v1118_v24 = vadd.f32 %v2651_v13, %v921_v16  ;;  %v923_v31 = vpop.f32.mrb[25].mxu1  ;;  %v1293_v6 = vrot.slane %v1292_v10, 2  ;;  %v1306_v12 = vrot.slane %v1305_v3, 2 }
 0x125   : > { %v1051_v21 = vadd.f32 %v2618_v45, %v753_v63  ;;  %v755_v32 = vpop.f32.mrb[26].mxu0  ;;  %v1119_v36 = vadd.f32 %v2656_v15, %v923_v31  ;;  %v925_v37 = vpop.f32.mrb[26].mxu1 }
 0x126   : > { %v1178_v38 = vmax.f32 %v1050_v25, 0.0  ;;  %v1052_v39 = vadd.f32 %v2623_v48, %v755_v32  ;;  %v757_v9 = vpop.f32.mrb[27].mxu0  ;;  %v1246_v35 = vmax.f32 %v1118_v24, 0.0  ;;  %v1120_v40 = vadd.f32 %v2661_v20, %v925_v37  ;;  %v927_v43 = vpop.f32.mrb[27].mxu1 }
 0x127   : > { %v1179_v44 = vmax.f32 %v1051_v21, 0.0  ;;  %v1053_v46 = vadd.f32 %v2631_v52, %v757_v9  ;;  %v1247_v47 = vmax.f32 %v1119_v36, 0.0  ;;  %v1121_v14 = vadd.f32 %v2670_v29, %v927_v43 }
 0x128   : > { %v1313_v41 = vadd.f32 %v1312_v2, %v1178_v38  ;;  %v1180_v50 = vmax.f32 %v1052_v39, 0.0  ;;  %v1419_v51 = vadd.f32 %v1418_v28, %v1246_v35  ;;  %v1248_v54 = vmax.f32 %v1120_v40, 0.0 }
 0x129   : > { %v1326_v55 = vadd.f32 %v1325_v7, %v1179_v44  ;;  %v1181_v57 = vmax.f32 %v1053_v46, 0.0  ;;  %v1432_v58 = vadd.f32 %v1431_v33, %v1247_v47  ;;  %v1249_v59 = vmax.f32 %v1121_v14, 0.0 }
 0x12a   : > { %v1314_v18 = vadd.f32 %v1313_v41, %v1180_v50  ;;  %v2732_v16 = vadd.f32 %v1419_v51, %v1248_v54  ;;  %v1294_v38 = vadd.f32 %v1293_v6, %v1292_v10  ;;  %v1307_v39 = vadd.f32 %v1306_v12, %v1305_v3 }
 0x12b   : > { %v1327_v25 = vadd.f32 %v1326_v55, %v1181_v57  ;;  %v761_v63 = vpop.f32.mrb[28].mxu0  ;;  %v2734_v24 = vadd.f32 %v1432_v58, %v1249_v59  ;;  %v931_v31 = vpop.f32.mrb[28].mxu1 }
 0x12c   : > { %v1054_v21 = vadd.f32 %v2651_v13, %v761_v63  ;;  %v763_v2 = vpop.f32.mrb[29].mxu0  ;;  %v1122_v28 = vadd.f32 %v2543_v61, %v931_v31  ;;  %v933_v32 = vpop.f32.mrb[29].mxu1  ;;  %v1295_v10 = vrot.slane %v1294_v38, 1  ;;  %v1308_v3 = vrot.slane %v1307_v39, 1 }
 0x12d   : > { %v1055_v7 = vadd.f32 %v2656_v15, %v763_v2  ;;  %v765_v33 = vpop.f32.mrb[30].mxu0  ;;  %v1123_v36 = vadd.f32 %v2548_v62, %v933_v32  ;;  %v935_v37 = vpop.f32.mrb[30].mxu1 }
 0x12e   : > { %v1182_v9 = vmax.f32 %v1054_v21, 0.0  ;;  %v1056_v35 = vadd.f32 %v2661_v20, %v765_v33  ;;  %v767_v40 = vpop.f32.mrb[31].mxu0  ;;  %v937_v43 = vpop.f32.mrb[31].mxu1  ;;  %v1250_v41 = vmax.f32 %v1122_v28, 0.0  ;;  %v1124_v50 = vadd.f32 %v2553_v0, %v935_v37 }
 0x12f   : > { %v1183_v44 = vmax.f32 %v1055_v7, 0.0  ;;  %v1057_v46 = vadd.f32 %v2670_v29, %v767_v40  ;;  %v1251_v55 = vmax.f32 %v1123_v36, 0.0  ;;  %v1125_v57 = vadd.f32 %v2561_v4, %v937_v43 }
 0x130   : > { %v1315_v47 = vadd.f32 %v1314_v18, %v1182_v9  ;;  %v1184_v14 = vmax.f32 %v1056_v35, 0.0  ;;  %v1252_v59 = vmax.f32 %v1124_v50, 0.0  ;;  %v1296_v9 = vadd.f32 %v1295_v10, %v1294_v38 }
 0x131   : > { %v1328_v51 = vadd.f32 %v1327_v25, %v1183_v44  ;;  %v1185_v54 = vmax.f32 %v1057_v46, 0.0  ;;  %v1253_v63 = vmax.f32 %v1125_v57, 0.0  ;;  %v1309_v35 = vadd.f32 %v1308_v3, %v1307_v39 }
 0x132   : > { %v1316_v58 = vadd.f32 %v1315_v47, %v1184_v14  ;;  %v1440_v28 = vadd.f32 %v1252_v59, %v1250_v41 }
 0x133   : > { %v1329_v6 = vadd.f32 %v1328_v51, %v1185_v54  ;;  %v771_v12 = vpop.f32.mrb[32].mxu0  ;;  %v941_v31 = vpop.f32.mrb[32].mxu1  ;;  %v1453_v36 = vadd.f32 %v1253_v63, %v1251_v55 }
 0x134   : > { %v1317_v21 = vrot.slane %v1316_v58, 4  ;;  %v1058_v18 = vadd.f32 %v2543_v61, %v771_v12  ;;  %v773_v2 = vpop.f32.mrb[33].mxu0  ;;  %v943_v32 = vpop.f32.mrb[33].mxu1  ;;  %v1126_v57 = vadd.f32 %v2575_v17, %v941_v31 }
 0x135   : > { %v1330_v25 = vrot.slane %v1329_v6, 4  ;;  %v1059_v7 = vadd.f32 %v2548_v62, %v773_v2  ;;  %v775_v33 = vpop.f32.mrb[34].mxu0  ;;  %v945_v37 = vpop.f32.mrb[34].mxu1  ;;  %v1127_v59 = vadd.f32 %v2580_v19, %v943_v32 }
 0x136   : > { %v1318_v40 = vadd.f32 %v1317_v21, %v1316_v58  ;;  %v1060_v43 = vadd.f32 %v2553_v0, %v775_v33  ;;  %v777_v44 = vpop.f32.mrb[35].mxu0  ;;  %v947_v46 = vpop.f32.mrb[35].mxu1  ;;  %v1186_v14 = vmax.f32 %v1058_v18, 0.0  ;;  %v1128_v38 = vadd.f32 %v2585_v22, %v945_v37 }
 0x137   : > { %v1331_v47 = vadd.f32 %v1330_v25, %v1329_v6  ;;  %v1187_v50 = vmax.f32 %v1059_v7, 0.0  ;;  %v1061_v41 = vadd.f32 %v2561_v4, %v777_v44  ;;  %v1129_v39 = vadd.f32 %v2593_v26, %v947_v46 }
 0x138   : > { %v1319_v51 = vrot.slane %v1318_v40, 2  ;;  %v1188_v54 = vmax.f32 %v1060_v43, 0.0  ;;  %v1254_v58 = vmax.f32 %v1126_v57, 0.0  ;;  %v1255_v6 = vmax.f32 %v1127_v59, 0.0 }
 0x139   : > { %v1332_v55 = vrot.slane %v1331_v47, 2  ;;  %v1189_v12 = vmax.f32 %v1061_v41, 0.0  ;;  %v1256_v2 = vmax.f32 %v1128_v38, 0.0  ;;  %v1257_v25 = vmax.f32 %v1129_v39, 0.0 }
 0x13a   : > { %v1320_v10 = vadd.f32 %v1319_v51, %v1318_v40  ;;  %v1336_v3 = vadd.f32 %v1188_v54, %v1186_v14  ;;  %v1441_v43 = vadd.f32 %v1440_v28, %v1254_v58  ;;  %v1454_v44 = vadd.f32 %v1453_v36, %v1255_v6 }
 0x13b   : > { %v1333_v63 = vadd.f32 %v1332_v55, %v1331_v47  ;;  %v1349_v21 = vadd.f32 %v1189_v12, %v1187_v50  ;;  %v781_v18 = vpop.f32.mrb[36].mxu0  ;;  %v951_v7 = vpop.f32.mrb[36].mxu1 }
 0x13c   : > { %v1321_v33 = vrot.slane %v1320_v10, 1  ;;  %v1062_v31 = vadd.f32 %v2575_v17, %v781_v18  ;;  %v783_v32 = vpop.f32.mrb[37].mxu0  ;;  %v953_v41 = vpop.f32.mrb[37].mxu1  ;;  %v1130_v14 = vadd.f32 %v2610_v42, %v951_v7  ;;  %v1442_v55 = vadd.f32 %v1441_v43, %v1256_v2 }
 0x13d   : > { %v1334_v37 = vrot.slane %v1333_v63, 1  ;;  %v1063_v46 = vadd.f32 %v2580_v19, %v783_v32  ;;  %v785_v40 = vpop.f32.mrb[38].mxu0  ;;  %v1131_v47 = vadd.f32 %v2618_v45, %v953_v41  ;;  %v955_v50 = vpop.f32.mrb[38].mxu1  ;;  %v1455_v39 = vadd.f32 %v1454_v44, %v1257_v25 }
 0x13e   : > { %v1322_v51 = vadd.f32 %v1321_v33, %v1320_v10  ;;  %v1190_v54 = vmax.f32 %v1062_v31, 0.0  ;;  %v1064_v57 = vadd.f32 %v2585_v22, %v785_v40  ;;  %v787_v59 = vpop.f32.mrb[39].mxu0  ;;  %v957_v12 = vpop.f32.mrb[39].mxu1  ;;  %v1258_v7 = vmax.f32 %v1130_v14, 0.0 }
 0x13f   : > { %v1335_v38 = vadd.f32 %v1334_v37, %v1333_v63  ;;  %v1191_v28 = vmax.f32 %v1063_v46, 0.0  ;;  %v1065_v36 = vadd.f32 %v2593_v26, %v787_v59  ;;  %v1259_v31 = vmax.f32 %v1131_v47, 0.0 }
 0x140   : > { %v2759_v58 = vsel %vm1508_vm1, %v1322_v51, %v1296_v9  ;;  %v1337_v6 = vadd.f32 %v1336_v3, %v1190_v54  ;;  %v1192_v18 = vmax.f32 %v1064_v57, 0.0  ;;  %v1443_v2 = vadd.f32 %v1442_v55, %v1258_v7 }
 0x141   : > { %v2762_v32 = vsel %vm1508_vm1, %v1335_v38, %v1309_v35  ;;  %v1350_v10 = vadd.f32 %v1349_v21, %v1191_v28  ;;  %v1193_v33 = vmax.f32 %v1065_v36, 0.0  ;;  %v1132_v63 = vadd.f32 %v2623_v48, %v955_v50 }
 0x142   : > { %v1338_v41 = vadd.f32 %v1337_v6, %v1192_v18  ;;  %v1133_v43 = vadd.f32 %v2631_v52, %v957_v12  ;;  %v1456_v44 = vadd.f32 %v1455_v39, %v1259_v31 }
 0x143   : > { %v1351_v37 = vadd.f32 %v1350_v10, %v1193_v33  ;;  %v791_v25 = vpop.f32.mrb[40].mxu0  ;;  %v961_v9 = vpop.f32.mrb[40].mxu1  ;;  %v1260_v40 = vmax.f32 %v1132_v63, 0.0 }
 0x144   : > { %v1066_v3 = vadd.f32 %v2610_v42, %v791_v25  ;;  %v793_v46 = vpop.f32.mrb[41].mxu0  ;;  %v1261_v14 = vmax.f32 %v1133_v43, 0.0  ;;  %v1134_v35 = vadd.f32 %v2651_v13, %v961_v9  ;;  %v963_v21 = vpop.f32.mrb[41].mxu1 }
 0x145   : > { %v1067_v47 = vadd.f32 %v2618_v45, %v793_v46  ;;  %v795_v51 = vpop.f32.mrb[42].mxu0  ;;  %v1135_v54 = vadd.f32 %v2656_v15, %v963_v21  ;;  %v965_v50 = vpop.f32.mrb[42].mxu1  ;;  %v1444_v12 = vadd.f32 %v1443_v2, %v1260_v40 }
 0x146   : > { %v1194_v57 = vmax.f32 %v1066_v3, 0.0  ;;  %v1068_v59 = vadd.f32 %v2623_v48, %v795_v51  ;;  %v797_v55 = vpop.f32.mrb[43].mxu0  ;;  %v1457_v38 = vadd.f32 %v1456_v44, %v1261_v14  ;;  %v967_v28 = vpop.f32.mrb[43].mxu1  ;;  %v1262_v6 = vmax.f32 %v1134_v35, 0.0 }
 0x147   : > { %v1195_v36 = vmax.f32 %v1067_v47, 0.0  ;;  %v1069_v39 = vadd.f32 %v2631_v52, %v797_v55  ;;  %v1263_v18 = vmax.f32 %v1135_v54, 0.0  ;;  %v1136_v33 = vadd.f32 %v2661_v20, %v965_v50 }
 0x148   : > { %v1339_v7 = vadd.f32 %v1338_v41, %v1194_v57  ;;  %v1196_v10 = vmax.f32 %v1068_v59, 0.0  ;;  %v1137_v31 = vadd.f32 %v2670_v29, %v967_v28  ;;  %v1445_v25 = vadd.f32 %v1444_v12, %v1262_v6 }
 0x149   : > { %v1352_v63 = vadd.f32 %v1351_v37, %v1195_v36  ;;  %v1197_v43 = vmax.f32 %v1069_v39, 0.0  ;;  %v1458_v9 = vadd.f32 %v1457_v38, %v1263_v18  ;;  %v1264_v46 = vmax.f32 %v1136_v33, 0.0 }
 0x14a   : > { %v1340_v3 = vadd.f32 %v1339_v7, %v1196_v10  ;;  %v1265_v2 = vmax.f32 %v1137_v31, 0.0 }
 0x14b   : > { %v1353_v44 = vadd.f32 %v1352_v63, %v1197_v43  ;;  %v801_v40 = vpop.f32.mrb[44].mxu0  ;;  %v971_v14 = vpop.f32.mrb[44].mxu1  ;;  %v2775_v47 = vadd.f32 %v1445_v25, %v1264_v46 }
 0x14c   : > { %v1070_v21 = vadd.f32 %v2651_v13, %v801_v40  ;;  %v803_v35 = vpop.f32.mrb[45].mxu0  ;;  %v2777_v41 = vadd.f32 %v1458_v9, %v1265_v2  ;;  %v1138_v51 = vadd.f32 %v2543_v61, %v971_v14  ;;  %v973_v54 = vpop.f32.mrb[45].mxu1 }
 0x14d   : > { %v1071_v37 = vadd.f32 %v2656_v15, %v803_v35  ;;  %v805_v50 = vpop.f32.mrb[46].mxu0  ;;  %v1139_v57 = vadd.f32 %v2548_v62, %v973_v54  ;;  %v975_v59 = vpop.f32.mrb[46].mxu1 }
 0x14e   : > { %v1198_v55 = vmax.f32 %v1070_v21, 0.0  ;;  %v1072_v12 = vadd.f32 %v2661_v20, %v805_v50  ;;  %v807_v38 = vpop.f32.mrb[47].mxu0  ;;  %v977_v28 = vpop.f32.mrb[47].mxu1  ;;  %v1266_v7 = vmax.f32 %v1138_v51, 0.0  ;;  %v1140_v63 = vadd.f32 %v2553_v0, %v975_v59 }
 0x14f   : > { %v1199_v36 = vmax.f32 %v1071_v37, 0.0  ;;  %v1073_v39 = vadd.f32 %v2670_v29, %v807_v38  ;;  %v1267_v10 = vmax.f32 %v1139_v57, 0.0  ;;  %v1141_v43 = vadd.f32 %v2561_v4, %v977_v28 }
 0x150   : > { %v1341_v6 = vadd.f32 %v1340_v3, %v1198_v55  ;;  %v1200_v18 = vmax.f32 %v1072_v12, 0.0  ;;  %v1268_v2 = vmax.f32 %v1140_v63, 0.0 }
 0x151   : > { %v1354_v33 = vadd.f32 %v1353_v44, %v1199_v36  ;;  %v1201_v31 = vmax.f32 %v1073_v39, 0.0  ;;  %v1269_v40 = vmax.f32 %v1141_v43, 0.0 }
 0x152   : > { %v1342_v25 = vadd.f32 %v1341_v6, %v1200_v18  ;;  %v1466_v50 = vadd.f32 %v1268_v2, %v1266_v7 }
 0x153   : > { %v1355_v9 = vadd.f32 %v1354_v33, %v1201_v31  ;;  %v811_v46 = vpop.f32.mrb[48].mxu0  ;;  %v981_v14 = vpop.f32.mrb[48].mxu1  ;;  %v1479_v57 = vadd.f32 %v1269_v40, %v1267_v10 }
 0x154   : > { %v1343_v21 = vrot.slane %v1342_v25, 4  ;;  %v1074_v35 = vadd.f32 %v2543_v61, %v811_v46  ;;  %v813_v54 = vpop.f32.mrb[49].mxu0  ;;  %v983_v3 = vpop.f32.mrb[49].mxu1  ;;  %v1142_v33 = vadd.f32 %v2575_v17, %v981_v14 }
 0x155   : > { %v1356_v37 = vrot.slane %v1355_v9, 4  ;;  %v1075_v51 = vadd.f32 %v2548_v62, %v813_v54  ;;  %v815_v44 = vpop.f32.mrb[50].mxu0  ;;  %v985_v59 = vpop.f32.mrb[50].mxu1  ;;  %v1143_v7 = vadd.f32 %v2580_v19, %v983_v3 }
 0x156   : > { %v1344_v55 = vadd.f32 %v1343_v21, %v1342_v25  ;;  %v817_v12 = vpop.f32.mrb[51].mxu0  ;;  %v987_v38 = vpop.f32.mrb[51].mxu1  ;;  %v1076_v36 = vadd.f32 %v2553_v0, %v815_v44  ;;  %v1202_v61 = vmax.f32 %v1074_v35, 0.0  ;;  %v1270_v43 = vmax.f32 %v1142_v33, 0.0 }
 0x157   : > { %v1357_v28 = vadd.f32 %v1356_v37, %v1355_v9  ;;  %v1077_v39 = vadd.f32 %v2561_v4, %v817_v12  ;;  %v1203_v18 = vmax.f32 %v1075_v51, 0.0  ;;  %v1144_v25 = vadd.f32 %v2585_v22, %v985_v59 }
 0x158   : > { %v1345_v6 = vrot.slane %v1344_v55, 2  ;;  %v1204_v62 = vmax.f32 %v1076_v36, 0.0  ;;  %v1145_v9 = vadd.f32 %v2593_v26, %v987_v38  ;;  %v1271_v40 = vmax.f32 %v1143_v7, 0.0 }
 0x159   : > { %v1358_v31 = vrot.slane %v1357_v28, 2  ;;  %v1205_v63 = vmax.f32 %v1077_v39, 0.0  ;;  %v1467_v37 = vadd.f32 %v1466_v50, %v1270_v43  ;;  %v1272_v51 = vmax.f32 %v1144_v25, 0.0 }
 0x15a   : > { %v1346_v10 = vadd.f32 %v1345_v6, %v1344_v55  ;;  %v1362_v0 = vadd.f32 %v1204_v62, %v1202_v61  ;;  %v1480_v59 = vadd.f32 %v1479_v57, %v1271_v40  ;;  %v1273_v36 = vmax.f32 %v1145_v9, 0.0 }
 0x15b   : > { %v1359_v46 = vadd.f32 %v1358_v31, %v1357_v28  ;;  %v1375_v2 = vadd.f32 %v1205_v63, %v1203_v18  ;;  %v821_v4 = vpop.f32.mrb[52].mxu0  ;;  %v991_v21 = vpop.f32.mrb[52].mxu1  ;;  %v1468_v18 = vadd.f32 %v1467_v37, %v1272_v51 }
 0x15c   : > { %v1347_v35 = vrot.slane %v1346_v10, 1  ;;  %v1078_v14 = vadd.f32 %v2575_v17, %v821_v4  ;;  %v823_v54 = vpop.f32.mrb[53].mxu0  ;;  %v993_v44 = vpop.f32.mrb[53].mxu1  ;;  %v1481_v63 = vadd.f32 %v1480_v59, %v1273_v36  ;;  %v1146_v43 = vadd.f32 %v2610_v42, %v991_v21 }
 0x15d   : > { %v1360_v3 = vrot.slane %v1359_v46, 1  ;;  %v1079_v55 = vadd.f32 %v2580_v19, %v823_v54  ;;  %v825_v12 = vpop.f32.mrb[54].mxu0  ;;  %v995_v38 = vpop.f32.mrb[54].mxu1  ;;  %v1147_v9 = vadd.f32 %v2618_v45, %v993_v44 }
 0x15e   : > { %v1348_v28 = vadd.f32 %v1347_v35, %v1346_v10  ;;  %v1206_v39 = vmax.f32 %v1078_v14, 0.0  ;;  %v1080_v6 = vadd.f32 %v2585_v22, %v825_v12  ;;  %v827_v61 = vpop.f32.mrb[55].mxu0  ;;  %v997_v33 = vpop.f32.mrb[55].mxu1  ;;  %v1274_v4 = vmax.f32 %v1146_v43, 0.0 }
 0x15f   : > { %v1361_v31 = vadd.f32 %v1360_v3, %v1359_v46  ;;  %v1207_v62 = vmax.f32 %v1079_v55, 0.0  ;;  %v1081_v50 = vadd.f32 %v2593_v26, %v827_v61  ;;  %v1148_v26 = vadd.f32 %v2623_v48, %v995_v38 }
 0x160   : > { %v2800_v7 = vsel %vm1510_vm2, %v1348_v28, %v2759_v58  ;;  %v1363_v19 = vadd.f32 %v1362_v0, %v1206_v39  ;;  %v1208_v57 = vmax.f32 %v1080_v6, 0.0  ;;  %v1149_v40 = vadd.f32 %v2631_v52, %v997_v33 }
 0x161   : > { %v2805_v10 = vsel %vm1510_vm2, %v1361_v31, %v2762_v32  ;;  %v1376_v22 = vadd.f32 %v1375_v2, %v1207_v62  ;;  %v1209_v25 = vmax.f32 %v1081_v50, 0.0  ;;  %v1275_v0 = vmax.f32 %v1147_v9, 0.0 }
 0x162   : > { %v1364_v46 = vadd.f32 %v1363_v19, %v1208_v57  ;;  %v1469_v37 = vadd.f32 %v1468_v18, %v1274_v4  ;;  %v1276_v32 = vmax.f32 %v1148_v26, 0.0  ;;  %v1277_v51 = vmax.f32 %v1149_v40, 0.0 }
 0x163   : > { %v1377_v58 = vadd.f32 %v1376_v22, %v1209_v25  ;;  %v831_v35 = vpop.f32.mrb[56].mxu0  ;;  %v1001_v14 = vpop.f32.mrb[56].mxu1  ;;  %v1482_v55 = vadd.f32 %v1481_v63, %v1275_v0 }
 0x164   : > { %v1082_v21 = vadd.f32 %v2610_v42, %v831_v35  ;;  %v833_v54 = vpop.f32.mrb[57].mxu0  ;;  %v1003_v2 = vpop.f32.mrb[57].mxu1  ;;  %v1150_v12 = vadd.f32 %v2651_v13, %v1001_v14  ;;  %v1470_v6 = vadd.f32 %v1469_v37, %v1276_v32 }
 0x165   : > { %v1083_v3 = vadd.f32 %v2618_v45, %v833_v54  ;;  %v835_v44 = vpop.f32.mrb[58].mxu0  ;;  %v1151_v59 = vadd.f32 %v2656_v15, %v1003_v2  ;;  %v1005_v36 = vpop.f32.mrb[58].mxu1  ;;  %v1483_v62 = vadd.f32 %v1482_v55, %v1277_v51 }
 0x166   : > { %v1210_v38 = vmax.f32 %v1082_v21, 0.0  ;;  %v1084_v28 = vadd.f32 %v2623_v48, %v835_v44  ;;  %v837_v39 = vpop.f32.mrb[59].mxu0  ;;  %v1152_v61 = vadd.f32 %v2661_v20, %v1005_v36  ;;  %v1007_v18 = vpop.f32.mrb[59].mxu1  ;;  %v1278_v50 = vmax.f32 %v1150_v12, 0.0 }
 0x167   : > { %v1211_v33 = vmax.f32 %v1083_v3, 0.0  ;;  %v1085_v31 = vadd.f32 %v2631_v52, %v837_v39  ;;  %v1279_v57 = vmax.f32 %v1151_v59, 0.0  ;;  %v1153_v4 = vadd.f32 %v2670_v29, %v1007_v18 }
 0x168   : > { %v1365_v19 = vadd.f32 %v1364_v46, %v1210_v38  ;;  %v1212_v63 = vmax.f32 %v1084_v28, 0.0  ;;  %v1280_v43 = vmax.f32 %v1152_v61, 0.0  ;;  %v1471_v9 = vadd.f32 %v1470_v6, %v1278_v50 }
 0x169   : > { %v1378_v22 = vadd.f32 %v1377_v58, %v1211_v33  ;;  %v1213_v25 = vmax.f32 %v1085_v31, 0.0  ;;  %v1484_v40 = vadd.f32 %v1483_v62, %v1279_v57  ;;  %v1281_v21 = vmax.f32 %v1153_v4, 0.0  ;;  %v2180_v33 = vld [vmem:[%s2947_s1] sm:$0xff]  ;;  %v2182_v57 = vld [vmem:[%s2947_s1 + $0x30] sm:$0xff] }
 0x16a   : > { %v1366_v26 = vadd.f32 %v1365_v19, %v1212_v63  ;;  %v2818_v14 = vadd.f32 %v1471_v9, %v1280_v43  ;;  %v1094_v36 = vadd.f32 %v2575_v17, %v2555_v1  ;;  %v2181_v19 = vld [vmem:[%s2947_s1 + $0x28] sm:$0xff]  ;;  %v1096_v43 = vadd.f32 %v2182_v57, %v2566_v8  ;;  %v2184_v4 = vld [vmem:[%s2947_s1 + $0x10] sm:$0xff] }
 0x16b   : > { %v1379_v35 = vadd.f32 %v1378_v22, %v1213_v25  ;;  %v841_v0 = vpop.f32.mrb[60].mxu0  ;;  %v2822_v51 = vadd.f32 %v1484_v40, %v1281_v21  ;;  %v1095_v63 = vadd.f32 %v2181_v19, %v2563_v5  ;;  %v2183_v25 = vld [vmem:[%s2947_s1 + $0x8] sm:$0xff]  ;;  %v2185_v40 = vld [vmem:[%s2947_s1 + $0x38] sm:$0xff]  ;;  %v1098_v8 = vadd.f32 %v2610_v42, %v2587_v23 }
 0x16c   : > { %v1086_v54 = vadd.f32 %v2651_v13, %v841_v0  ;;  %v843_v37 = vpop.f32.mrb[61].mxu0  ;;  %v1222_v50 = vmax.f32 %v1094_v36, 0.0  ;;  %v1099_v0 = vadd.f32 %v2618_v45, %v2595_v27  ;;  %v1421_v19 = vrot.slane %v2732_v16, 4 }
 0x16d   : > { %v1087_v46 = vadd.f32 %v2656_v15, %v843_v37  ;;  %v845_v32 = vpop.f32.mrb[62].mxu0  ;;  %v1434_v57 = vrot.slane %v2734_v24, 4 }
 0x16e   : > { %v1214_v58 = vmax.f32 %v1086_v54, 0.0  ;;  %v1088_v2 = vadd.f32 %v2661_v20, %v845_v32  ;;  %v847_v3 = vpop.f32.mrb[63].mxu0  ;;  %v2186_v32 = vld [vmem:[%s2947_s1 + $0x18] sm:$0xff] }
 0x16f   : > { %v1215_v44 = vmax.f32 %v1087_v46, 0.0  ;;  %v1089_v55 = vadd.f32 %v2670_v29, %v847_v3  ;;  %v1100_v3 = vadd.f32 %v2623_v48, %v2598_v30  ;;  %v1102_v30 = vadd.f32 %v2651_v13, %v2625_v49 }
 0x170   : > { %v1367_v12 = vadd.f32 %v1366_v26, %v1214_v58  ;;  %v1216_v59 = vmax.f32 %v1088_v2, 0.0  ;;  %v1223_v2 = vmax.f32 %v1095_v63, 0.0  ;;  %v1447_v63 = vrot.slane %v2775_v47, 4 }
 0x171   : > { %v1380_v38 = vadd.f32 %v1379_v35, %v1215_v44  ;;  %v1217_v28 = vmax.f32 %v1089_v55, 0.0  ;;  %v1097_v35 = vadd.f32 %v2185_v40, %v2569_v11  ;;  %v1101_v11 = vadd.f32 %v2631_v52, %v2601_v34 }
 0x172   : > { %v1368_v39 = vadd.f32 %v1367_v12, %v1216_v59  ;;  %v1224_v55 = vmax.f32 %v1096_v43, 0.0  ;;  %v1226_v59 = vmax.f32 %v1098_v8, 0.0  ;;  %v1473_v43 = vrot.slane %v2818_v14, 4 }
 0x173   : > { %v1381_v6 = vadd.f32 %v1380_v38, %v1217_v28  ;;  %v851_v61 = vpop.f32.mrb[64].mxu0  ;;  %v1225_v12 = vmax.f32 %v1097_v35, 0.0  ;;  %v1227_v38 = vmax.f32 %v1099_v0, 0.0  ;;  %v1229_v34 = vmax.f32 %v1101_v11, 0.0 }
 0x174   : > { %v1369_v18 = vrot.slane %v1368_v39, 4  ;;  %v1090_v31 = vadd.f32 %v2180_v33, %v851_v61  ;;  %v853_v62 = vpop.f32.mrb[65].mxu0  ;;  %v1228_v61 = vmax.f32 %v1100_v3, 0.0  ;;  %v1474_v35 = vadd.f32 %v1473_v43, %v2818_v14 }
 0x175   : > { %v1382_v1 = vrot.slane %v1381_v6, 4  ;;  %v855_v17 = vpop.f32.mrb[66].mxu0  ;;  %v1091_v9 = vadd.f32 %v2183_v25, %v853_v62  ;;  %v1104_v62 = vadd.f32 %v2661_v20, %v2636_v56  ;;  %v1105_v56 = vadd.f32 %v2670_v29, %v2639_v60 }
 0x176   : > { %v1370_v22 = vadd.f32 %v1369_v18, %v1368_v39  ;;  %v1092_v26 = vadd.f32 %v2184_v4, %v855_v17  ;;  %v857_v5 = vpop.f32.mrb[67].mxu0  ;;  %v1218_v37 = vmax.f32 %v1090_v31, 0.0  ;;  %v1103_v31 = vadd.f32 %v2656_v15, %v2633_v53 }
 0x177   : > { %v1383_v21 = vadd.f32 %v1382_v1, %v1381_v6  ;;  %v1093_v58 = vadd.f32 %v2186_v32, %v857_v5  ;;  %v1219_v44 = vmax.f32 %v1091_v9, 0.0  ;;  %v1230_v17 = vmax.f32 %v1102_v30, 0.0 }
 0x178   : > { %v1371_v54 = vrot.slane %v1370_v22, 2  ;;  %v1220_v46 = vmax.f32 %v1092_v26, 0.0  ;;  %v1460_v15 = vrot.slane %v2777_v41, 4  ;;  %v1231_v25 = vmax.f32 %v1103_v31, 0.0 }
 0x179   : > { %v1384_v23 = vrot.slane %v1383_v21, 2  ;;  %v1221_v45 = vmax.f32 %v1093_v58, 0.0  ;;  %v1486_v9 = vrot.slane %v2822_v51, 4  ;;  %v1232_v4 = vmax.f32 %v1104_v62, 0.0 }
 0x17a   : > { %v1372_v42 = vadd.f32 %v1371_v54, %v1370_v22  ;;  %v1388_v27 = vadd.f32 %v1220_v46, %v1218_v37  ;;  %v1448_v26 = vadd.f32 %v1447_v63, %v2775_v47  ;;  %v1233_v8 = vmax.f32 %v1105_v56, 0.0 }
 0x17b   : > { %v1385_v36 = vadd.f32 %v1384_v23, %v1383_v21  ;;  %v1401_v6 = vadd.f32 %v1221_v45, %v1219_v44  ;;  %v1461_v60 = vadd.f32 %v1460_v15, %v2777_v41  ;;  %v1487_v54 = vadd.f32 %v1486_v9, %v2822_v51 }
 0x17c   : > { %v1373_v28 = vrot.slane %v1372_v42, 1  ;;  %v1389_v39 = vadd.f32 %v1388_v27, %v1222_v50  ;;  %v1475_v58 = vrot.slane %v1474_v35, 2 }
 0x17d   : > { %v1386_v48 = vrot.slane %v1385_v36, 1  ;;  %v1402_v33 = vadd.f32 %v1401_v6, %v1223_v2  ;;  %v1462_v47 = vrot.slane %v1461_v60, 2 }
 0x17e   : > { %v1374_v52 = vadd.f32 %v1373_v28, %v1372_v42  ;;  %v1390_v18 = vadd.f32 %v1389_v39, %v1224_v55  ;;  %v1476_v41 = vadd.f32 %v1475_v58, %v1474_v35 }
 0x17f   : > { %v1387_v50 = vadd.f32 %v1386_v48, %v1385_v36  ;;  %v1403_v1 = vadd.f32 %v1402_v33, %v1225_v12  ;;  %v1463_v27 = vadd.f32 %v1462_v47, %v1461_v60 }
 0x180   : > { %v1513_v49 = vsel %vm1512_vm3, %v1374_v52, %v2800_v7  ;;  %v1391_v13 = vadd.f32 %v1390_v18, %v1226_v59  ;;  %v1422_v7 = vadd.f32 %v1421_v19, %v2732_v16  ;;  %v1449_v16 = vrot.slane %v1448_v26, 2 }
 0x181   : > { %v2874_v53 = vsel %vm1512_vm3, %v1387_v50, %v2805_v10  ;;  %v1404_v22 = vadd.f32 %v1403_v1, %v1227_v38  ;;  %v1435_v10 = vadd.f32 %v1434_v57, %v2734_v24  ;;  %v1488_v24 = vrot.slane %v1487_v54, 2 }
 0x182   : > { %v1392_v20 = vadd.f32 %v1391_v13, %v1228_v61  ;;  %v1423_v21 = vrot.slane %v1422_v7, 2  ;;  %v1450_v23 = vadd.f32 %v1449_v16, %v1448_v26  ;;  %v1477_v39 = vrot.slane %v1476_v41, 1 }
 0x183   : > { %v1405_v40 = vadd.f32 %v1404_v22, %v1229_v34  ;;  %v1436_v32 = vrot.slane %v1435_v10, 2  ;;  %v1489_v51 = vadd.f32 %v1488_v24, %v1487_v54  ;;  %v1464_v6 = vrot.slane %v1463_v27, 1 }
 0x184   : > { %v1393_v5 = vadd.f32 %v1392_v20, %v1230_v17  ;;  %v1424_v11 = vadd.f32 %v1423_v21, %v1422_v7  ;;  %v1451_v59 = vrot.slane %v1450_v23, 1  ;;  %v1478_v62 = vadd.f32 %v1477_v39, %v1476_v41  ;;  %v1574_v7 = vld [vmem:[%s2950_s4] sm:$0x3] }
 0x185   : > { %v1406_v0 = vadd.f32 %v1405_v40, %v1231_v25  ;;  %v1437_v44 = vadd.f32 %v1436_v32, %v1435_v10  ;;  %v1490_v34 = vrot.slane %v1489_v51, 1  ;;  %v1465_v50 = vadd.f32 %v1464_v6, %v1463_v27 }
 0x186   : > { %v1394_v29 = vadd.f32 %v1393_v5, %v1232_v4  ;;  %v1425_v12 = vrot.slane %v1424_v11, 1  ;;  %v1452_v52 = vadd.f32 %v1451_v59, %v1450_v23 }
 0x187   : > { %v1407_v46 = vadd.f32 %v1406_v0, %v1233_v8  ;;  %v1438_v28 = vrot.slane %v1437_v44, 1  ;;  %v1491_v1 = vadd.f32 %v1490_v34, %v1489_v51 }
 0x188   : > { %v1395_v37 = vrot.slane %v1394_v29, 4  ;;  %v1426_v48 = vadd.f32 %v1425_v12, %v1424_v11 }
 0x189   : > { %v1408_v3 = vrot.slane %v1407_v46, 4  ;;  %v1439_v31 = vadd.f32 %v1438_v28, %v1437_v44 }
 0x18a   : > { %v1396_v2 = vadd.f32 %v1395_v37, %v1394_v29 }
 0x18b   : > { %v1409_v42 = vadd.f32 %v1408_v3, %v1407_v46 }
 0x18c   : > { %v1397_v14 = vrot.slane %v1396_v2, 2 }
 0x18d   : > { %v1410_v55 = vrot.slane %v1409_v42, 2 }
 0x18e   : > { %v1398_v45 = vadd.f32 %v1397_v14, %v1396_v2 }
 0x18f   : > { %v1411_v38 = vadd.f32 %v1410_v55, %v1409_v42 }
 0x190   : > { %v1399_v36 = vrot.slane %v1398_v45, 1 }
 0x191   : > { %v1412_v30 = vrot.slane %v1411_v38, 1 }
 0x192   : > { %v1400_v61 = vadd.f32 %v1399_v36, %v1398_v45 }
 0x193   : > { %v1413_v18 = vadd.f32 %v1412_v30, %v1411_v38 }
 0x194   : > { %v1515_v33 = vsel %vm1514_vm4, %v1400_v61, %v1513_v49  ;;  %v1576_v49 = vlaneseq }
 0x195   : > { %v1517_v19 = vsel %vm1516_vm5, %v1426_v48, %v1515_v33  ;;  %v1525_v13 = vsel %vm1514_vm4, %v1413_v18, %v2874_v53 }
 0x196   : > { %v1519_v63 = vsel %vm1518_vm6, %v1452_v52, %v1517_v19  ;;  %v1526_v57 = vsel %vm1516_vm5, %v1439_v31, %v1525_v13  ;;  %v1577_v22 = vshrl.u32 %v1576_v49, 7 }
 0x197   : > { %v1521_v17 = vsel %vm1520_vm7, %v1478_v62, %v1519_v63  ;;  %v1527_v43 = vsel %vm1518_vm6, %v1465_v50, %v1526_v57 }
 0x198   : > { %v1528_v56 = vsel %vm1520_vm7, %v1491_v1, %v1527_v43  ;;  %v1540_v20 = vpack.c.bf16 %v1521_v17, %v1521_v17  ;;  %v1578_v25 = vsub.s32 0, %v1577_v22  ;;  %v1582_v9 = vsub.s32 1, %v1577_v22 }
 0x199   : > { %v1541_v15 = vpack.c.bf16 %v1528_v56, %v1528_v56 }
 0x19a   : > { %v1579_v53 = vrot.slane %v1574_v7, %v1578_v25  ;;  %v1583_v4 = vrot.slane %v1574_v7, %v1582_v9 }
 0x19b   : > { %1778 = vmatprep.mubr.bf16.mxu1 %v1541_v15 }
 0x19c   : > { %1779 = vmatmul.mubr.bf16.vlgmr.msra.gmra.mrb[60].mxu1 %v1540_v20 }
 0x26f   : > { %v1780_v26 = vpop.f32.mrb[60].mxu1 }
 0x270   : > { %v1781_v5 = vadd.f32 %v1780_v26, %v1579_v53  ;;  %v1782_v40 = vpop.f32.mrb[61].mxu1 }
 0x271   : > { %v1783_v10 = vadd.f32 %v1782_v40, %v1583_v4  ;;  %v1784_v35 = vpop.f32.mrb[62].mxu1 }
 0x272   : > { %v1785_v8 = vpop.f32.mrb[63].mxu1  ;;  %v1787_v60 = vmul.f32 %v1781_v5, %v1781_v5 }
 0x273   : > { %v1788_v29 = vmul.f32 %v1783_v10, %v1783_v10 }
 0x275   : > { %v1789_v0 = vadd.f32 %v1788_v29, %v1787_v60 }
 0x277   : > { %1790 = vadd.xlane.f32.xlu0 %v1789_v0 }
 0x304   : > { %v1791_v21 = vpop.xlane.xlu0 %1790 }
 0x305   : > { %v1792_v54 = vadd.f32 1e-12, %v1791_v21 }
 0x307   : > { %2178 = vrsqrt.f32 %v1792_v54 }
 0x311   : > { %v2179_v16 = vpop.eup %2178 }
 0x312   : > { %v1794_v37 = vmul.f32 %v2179_v16, %v1781_v5  ;;  %v1795_v46 = vmul.f32 %v2179_v16, %v1783_v10 }
 0x314   : > { %1796 = vst [vmem:[%s261_s8] sm:$0xff] %v1794_v37  ;;  %1797 = vst [vmem:[%s261_s8 + $0x8] sm:$0xff] %v1795_v46 }
 0x315   : > { %2200 = shalt.err (!%p2197_p5)
}
 0x316   : > { %s2201_s17 = scalar_lea.hbm %s2899_s12, 256  ;;  %s2205_s27 = scalar_lea.hbm %s2951_s5, 512 }
 0x317   : > { %p2202_p6 = scmp.ne.s32.totalorder %s2899_s12, %s2201_s17  ;;  %p2206_p10 = scmp.lt.u32.totalorder %s2899_s12, %s2951_s5 }
 0x318   : > { %p2207_p11 = scmp.lt.u32.totalorder %s2205_s27, %s2201_s17  ;;  %p2209_p13 = scmp.lt.u32.totalorder %s2201_s17, %s2899_s12 }
 0x319   : > { %p2203_p7 = pnand %p2202_p6, %p2339_p4 }
 0x31a   : > { %p2208_p12 = por %p2207_p11, %p2206_p10 }
 0x31b   : > { %p2204_p9 = pneg %p2203_p7 }
 0x31c   : > { %p2210_p0 = por %p2209_p13, %p2208_p12 }
 0x31e   : > { %p2211_p1 = pnand %p2210_p0, %p2204_p9 }
 0x320   : > { %2214 = shalt.err (!%p2211_p1)
}
 0x321   : > { %2030 = dma.vmem_to_hbm [thread:$0]  (%p2339_p4), %s2901_s10, 256, %s2899_s12, %s1799_s13  }
 0x322 PF: > { %p2036_p2 = scmp.ge.s32.totalorder %s2265_s23, 2  ;;  %s1825_s8 = sand.u32 1, %s2245_s18  }
 0x323   : > { %s1826_s11 = scalar_lea.sflag [#allocation4], %s1825_s8 }
 0x324   : > { %p2033_p3 = pnand %p2036_p2, %p2346_p8 }
 0x326   : > { %2240 = dma.done.wait (!%p2033_p3), %s1826_s11, 256  }
 0x327   : > { %2242 = vsyncadd (!%p2033_p3), %s1826_s11, 4294967040  ;;  %s18_s23 = sadd.s32 1, %s2265_s23   ;;  %s2954_s18 = smov %s2249_s19 }
 0x328   : > { %p15_p5 = scmp.ge.s32.totalorder %s18_s23, 4   ;;  %s2955_s19 = smov %s2253_s20 }
 0x329   : > { %s2956_s20 = smov %s2352_s6  ;;  %s2957_s21 = smov %s2261_s22 }
 0x32a   : > { %s2958_s22 = smov %s2960_s26  ;;  %17 = sbr.rel (!%p15_p5) target bundleno = 4 (0x4), region = 86 }
 0x331   :  { %1831 = vsyncpa [#allocation4], 1 }
 0x332   :  { %1833 = vsyncpa [#allocation4 + $0x1], 1 }

</bundles_post_ra>
